<compile_context>
chip_gen: v7x
topology: tpu7x:2x2x1
jax: 0.10.0
libtpu: 0.0.40
codegen_flags: <defaults>
</compile_context>

<pallas_src>
import math

import jax
import jax.numpy as jnp
from jax.experimental import pallas as pl
from jax.experimental.pallas import tpu as pltpu

IN_DIM = 784          # hard-wired by images.view(-1, 784) in the torch module
N_HIDDEN = 32         # module default is 1024; kept small per instructions
N_CLASSES = 10
LEAKY_SLOPE = 0.01    # torch F.leaky_relu default negative_slope


# ------------------------------ Pallas kernels -------------------------------

def _layer1_stats_kernel(x_ref, mean_ref, sq_scale_ref, mu_ref, std_ref):
    """Sample-invariant layer-1 statistics (local reparameterization trick)."""
    x = x_ref[...]
    mu_ref[...] = jnp.dot(x, mean_ref[...], preferred_element_type=jnp.float32)
    var = jnp.dot(x * x, sq_scale_ref[...], preferred_element_type=jnp.float32)
    std_ref[...] = jnp.sqrt(var)


def _leaky_relu(z):
    return jnp.where(z >= 0, z, LEAKY_SLOPE * z)


def _guide_tail_kernel(mu1_ref, std1_ref, e1_ref, e2_ref, e3_ref, e4_ref,
                       w2_ref, b2_ref, v2_ref, c2_ref,
                       w3_ref, b3_ref, v3_ref, c3_ref,
                       w4_ref, b4_ref, v4_ref, c4_ref,
                       out_ref):
    """Fused guide for one chunk of samples (rows = samples_per_block * batch)."""
    # layer 1: shared (precomputed) mu/std, per-sample eps
    h = _leaky_relu(mu1_ref[...] + std1_ref[...] * e1_ref[...])

    def bayes_layer(h, w_ref, b_ref, v_ref, c_ref, eps):
        # ones-bias column folded into additive rows b (mean) and c (scale^2)
        mu = jnp.dot(h, w_ref[...], preferred_element_type=jnp.float32) + b_ref[...]
        var = jnp.dot(h * h, v_ref[...], preferred_element_type=jnp.float32) + c_ref[...]
        return mu + jnp.sqrt(var) * eps

    h = _leaky_relu(bayes_layer(h, w2_ref, b2_ref, v2_ref, c2_ref, e2_ref[...]))
    h = _leaky_relu(bayes_layer(h, w3_ref, b3_ref, v3_ref, c3_ref, e3_ref[...]))
    z = bayes_layer(h, w4_ref, b4_ref, v4_ref, c4_ref, e4_ref[...])

    # log_softmax (max-shifted, stable)
    m = jnp.max(z, axis=-1, keepdims=True)
    s = z - m
    lse = jnp.log(jnp.sum(jnp.exp(s), axis=-1, keepdims=True))
    out_ref[...] = (s - lse).astype(out_ref.dtype)


# ------------------------------- wrappers -------------------------------------

def layer1_stats(x, a1_mean, a1_sq_scale):
    """One-shot pallas_call computing (mu1, std1) shared by every sample."""
    n, d = x.shape
    h = a1_mean.shape[1]
    return pl.pallas_call(
        _layer1_stats_kernel,
        out_shape=(jax.ShapeDtypeStruct((n, h), jnp.float32),
                   jax.ShapeDtypeStruct((n, h), jnp.float32)),
        in_specs=[pl.BlockSpec((n, d), lambda: (0, 0)),
                  pl.BlockSpec((d, h), lambda: (0, 0)),
                  pl.BlockSpec((d, h), lambda: (0, 0))],
        out_specs=[pl.BlockSpec((n, h), lambda: (0, 0)),
                   pl.BlockSpec((n, h), lambda: (0, 0))],
    )(x, a1_mean, a1_sq_scale)


def _row_layout(n_images, n_samples):
    """Stack samples along the sublane axis: rows-per-block is a multiple of 8."""
    spb = 8 // math.gcd(n_images, 8)          # samples per block
    n_chunks = -(-n_samples // spb)           # ceil; extra samples are padded/discarded
    return spb, n_chunks


def bnn_forward(params, images, key, n_samples=10):
    """Equivalent of BNN.forward: (n_samples, N, n_classes) stacked guide logits."""
    x = images.reshape(-1, IN_DIM).astype(jnp.float32)
    n = x.shape[0]
    h, c = params["a2_mean"].shape[1], params["a4_mean"].shape[1]

    # --- sample-invariant precompute (hoisted out of the per-sample path) ---
    a1_sq = jnp.square(params["a1_dropout"] * params["a1_scale"])
    a2_sq = jnp.square(params["a2_dropout"] * params["a2_scale"])
    a3_sq = jnp.square(params["a3_dropout"] * params["a3_scale"])
    a4_sq = jnp.square(params["a4_scale"])
    # fold the appended ones-bias column into an additive row (exact identity)
    w2, b2, v2, c2 = params["a2_mean"][:h], params["a2_mean"][h:], a2_sq[:h], a2_sq[h:]
    w3, b3, v3, c3 = params["a3_mean"][:h], params["a3_mean"][h:], a3_sq[:h], a3_sq[h:]
    w4, b4, v4, c4 = params["a4_mean"][:h], params["a4_mean"][h:], a4_sq[:h], a4_sq[h:]

    mu1, std1 = layer1_stats(x, params["a1_mean"], a1_sq)     # once per batch

    # --- per-sample work, fused into a single pallas_call over sample-chunks ---
    spb, n_chunks = _row_layout(n, n_samples)
    rpb = spb * n                   # rows per block (multiple of 8 -> full sublanes)
    rows = n_chunks * rpb           # total rows (padded sample count * batch)

    k1, k2, k3, k4 = jax.random.split(key, 4)
    eps1 = jax.random.normal(k1, (rows, h), jnp.float32)
    eps2 = jax.random.normal(k2, (rows, h), jnp.float32)
    eps3 = jax.random.normal(k3, (rows, h), jnp.float32)
    eps4 = jax.random.normal(k4, (rows, c), jnp.float32)

    mu1_rep = jnp.tile(mu1, (spb, 1))       # (rpb, h): batch stats repeated per chunk
    std1_rep = jnp.tile(std1, (spb, 1))

    res = pl.BlockSpec((rpb, h), lambda i: (0, 0))      # VMEM-resident across the grid
    eps_h = pl.BlockSpec((rpb, h), lambda i: (i, 0))
    eps_c = pl.BlockSpec((rpb, c), lambda i: (i, 0))
    w_hh = pl.BlockSpec((h, h), lambda i: (0, 0))
    b_h = pl.BlockSpec((1, h), lambda i: (0, 0))
    w_hc = pl.BlockSpec((h, c), lambda i: (0, 0))
    b_c = pl.BlockSpec((1, c), lambda i: (0, 0))

    logits = pl.pallas_call(
        _guide_tail_kernel,
        out_shape=jax.ShapeDtypeStruct((rows, c), jnp.float32),
        grid=(n_chunks,),
        in_specs=[res, res, eps_h, eps_h, eps_h, eps_c,
                  w_hh, b_h, w_hh, b_h,
                  w_hh, b_h, w_hh, b_h,
                  w_hc, b_c, w_hc, b_c],
        out_specs=pl.BlockSpec((rpb, c), lambda i: (i, 0)),
        compiler_params=pltpu.CompilerParams(
            dimension_semantics=("parallel",)),  # independent samples: v7x 2-TC split
    )(mu1_rep, std1_rep, eps1, eps2, eps3, eps4,
      w2, b2, v2, c2, w3, b3, v3, c3, w4, b4, v4, c4)

    return logits.reshape(n_chunks * spb, n, c)[:n_samples]


def init_params(key, n_hidden=N_HIDDEN, n_classes=N_CLASSES):
    """Deterministic init mirroring the pyro guide's pyro.param initial values."""
    k1, k2, k3, k4 = jax.random.split(key, 4)
    return {
        "a1_mean": 0.01 * jax.random.normal(k1, (IN_DIM, n_hidden), jnp.float32),
        "a1_scale": 0.1 * jnp.ones((IN_DIM, n_hidden), jnp.float32),
        "a1_dropout": jnp.float32(0.25),
        "a2_mean": 0.01 * jax.random.normal(k2, (n_hidden + 1, n_hidden), jnp.float32),
        "a2_scale": 0.1 * jnp.ones((n_hidden + 1, n_hidden), jnp.float32),
        "a2_dropout": jnp.float32(1.0),
        "a3_mean": 0.01 * jax.random.normal(k3, (n_hidden + 1, n_hidden), jnp.float32),
        "a3_scale": 0.1 * jnp.ones((n_hidden + 1, n_hidden), jnp.float32),
        "a3_dropout": jnp.float32(1.0),
        "a4_mean": 0.01 * jax.random.normal(k4, (n_hidden + 1, n_classes), jnp.float32),
        "a4_scale": 0.1 * jnp.ones((n_hidden + 1, n_classes), jnp.float32),
    }


def reference_forward(params, images, key, n_samples=10):
    """Pure-JAX reference using the original append-ones-column formulation."""
    x = images.reshape(-1, IN_DIM).astype(jnp.float32)
    n = x.shape[0]
    h, c = params["a2_mean"].shape[1], params["a4_mean"].shape[1]
    spb, n_chunks = _row_layout(n, n_samples)
    rows = n_chunks * spb * n

    k1, k2, k3, k4 = jax.random.split(key, 4)
    eps1 = jax.random.normal(k1, (rows, h), jnp.float32)
    eps2 = jax.random.normal(k2, (rows, h), jnp.float32)
    eps3 = jax.random.normal(k3, (rows, h), jnp.float32)
    eps4 = jax.random.normal(k4, (rows, c), jnp.float32)

    hi = jax.lax.Precision.HIGHEST

    def layer(inp, mean, scale, e):
        mu = jnp.dot(inp, mean, precision=hi)
        std = jnp.sqrt(jnp.dot(inp * inp, scale * scale, precision=hi))
        return mu + std * e

    xs = jnp.tile(x, (n_chunks * spb, 1))
    ones = jnp.ones((rows, 1), jnp.float32)
    h1 = jax.nn.leaky_relu(layer(xs, params["a1_mean"],
                                 params["a1_dropout"] * params["a1_scale"], eps1))
    h1 = jnp.concatenate([h1, ones], axis=-1)
    h2 = jax.nn.leaky_relu(layer(h1, params["a2_mean"],
                                 params["a2_dropout"] * params["a2_scale"], eps2))
    h2 = jnp.concatenate([h2, ones], axis=-1)
    h3 = jax.nn.leaky_relu(layer(h2, params["a3_mean"],
                                 params["a3_dropout"] * params["a3_scale"], eps3))
    h3 = jnp.concatenate([h3, ones], axis=-1)
    z = layer(h3, params["a4_mean"], params["a4_scale"], eps4)
    logits = jax.nn.log_softmax(z, axis=-1)
    return logits.reshape(n_chunks * spb, n, c)[:n_samples]


# TODO(synk): pyro SVI / TraceMeanField_ELBO training (infer_parameters) and the model's
# OneHotCategorical observation sampling have no Pallas equivalent and are not part of
# forward(); only the guide-trace forward pass is implemented.

if __name__ == "__main__":
    key = jax.random.PRNGKey(0)
    pkey, xkey, skey = jax.random.split(key, 3)

    params = init_params(pkey)
    images = jax.random.normal(xkey, (2, 1, 28, 28), jnp.float32)  # NCHW -> (2, 784)
    n_samples = 3

    fwd = jax.jit(bnn_forward, static_argnames="n_samples")
    out = jax.block_until_ready(fwd(params, images, skey, n_samples=n_samples))

    assert out.shape == (n_samples, 2, N_CLASSES)
    # logits are log-probabilities: rows of exp(logits) sum to 1
    assert bool(jnp.all(jnp.abs(jnp.sum(jnp.exp(out), axis=-1) - 1.0) < 1e-4))
    # bias-fold / fusion identity vs the original concat-ones-column formulation
    ref = reference_forward(params, images, skey, n_samples=n_samples)
    assert bool(jnp.allclose(out, ref, atol=1e-3, rtol=1e-3))
    print("KERNEL_OK")
</pallas_src>

<mosaic_0001>
module attributes {stable_mosaic.version = 11 : i64} {
  func.func @_layer1_stats_kernel(%arg0: memref<2x784xf32, #tpu.memory_space<vmem>>, %arg1: memref<784x32xf32, #tpu.memory_space<vmem>>, %arg2: memref<784x32xf32, #tpu.memory_space<vmem>>, %arg3: memref<2x32xf32, #tpu.memory_space<vmem>>, %arg4: memref<2x32xf32, #tpu.memory_space<vmem>>) attributes {dimension_semantics = [], scalar_prefetch = 0 : i64, scratch_operands = 0 : i64, tpu.core_type = #tpu.core_type<tc>} {
    %c0 = arith.constant 0 : index
    %c0_0 = arith.constant 0 : index
    %0 = vector.load %arg0[%c0, %c0_0] : memref<2x784xf32, #tpu.memory_space<vmem>>, vector<2x784xf32>
    %c0_1 = arith.constant 0 : index
    %c0_2 = arith.constant 0 : index
    %1 = vector.load %arg1[%c0_1, %c0_2] : memref<784x32xf32, #tpu.memory_space<vmem>>, vector<784x32xf32>
    %cst = arith.constant dense<0.000000e+00> : vector<2x32xf32>
    %2 = tpu.matmul %0, %1, %cst {dimension_numbers = #tpu.dot_dimension_numbers<[1], [0], [0], [1], [0, 0, 1, 1], [], []>} : vector<2x784xf32>, vector<784x32xf32>, vector<2x32xf32> -> vector<2x32xf32>
    %c0_3 = arith.constant 0 : index
    %c0_4 = arith.constant 0 : index
    %3 = vector.load %arg3[%c0_3, %c0_4] : memref<2x32xf32, #tpu.memory_space<vmem>>, vector<2x32xf32>
    tpu.vector_store %arg3[%c0_3, %c0_4], %2 {strides = array<i32>} : memref<2x32xf32, #tpu.memory_space<vmem>>, vector<2x32xf32>,
    %4 = arith.mulf %0, %0 : vector<2x784xf32>
    %c0_5 = arith.constant 0 : index
    %c0_6 = arith.constant 0 : index
    %5 = vector.load %arg2[%c0_5, %c0_6] : memref<784x32xf32, #tpu.memory_space<vmem>>, vector<784x32xf32>
    %cst_7 = arith.constant dense<0.000000e+00> : vector<2x32xf32>
    %6 = tpu.matmul %4, %5, %cst_7 {dimension_numbers = #tpu.dot_dimension_numbers<[1], [0], [0], [1], [0, 0, 1, 1], [], []>} : vector<2x784xf32>, vector<784x32xf32>, vector<2x32xf32> -> vector<2x32xf32>
    %7 = math.sqrt %6 : vector<2x32xf32>
    %c0_8 = arith.constant 0 : index
    %c0_9 = arith.constant 0 : index
    %8 = vector.load %arg4[%c0_8, %c0_9] : memref<2x32xf32, #tpu.memory_space<vmem>>, vector<2x32xf32>
    tpu.vector_store %arg4[%c0_8, %c0_9], %7 {strides = array<i32>} : memref<2x32xf32, #tpu.memory_space<vmem>>, vector<2x32xf32>,
    return
  }
}

module attributes {stable_mosaic.version = 11 : i64} {
  func.func @_guide_tail_kernel(%arg0: i32, %arg1: memref<8x32xf32, #tpu.memory_space<vmem>>, %arg2: memref<8x32xf32, #tpu.memory_space<vmem>>, %arg3: memref<8x32xf32, #tpu.memory_space<vmem>>, %arg4: memref<8x32xf32, #tpu.memory_space<vmem>>, %arg5: memref<8x32xf32, #tpu.memory_space<vmem>>, %arg6: memref<8x10xf32, #tpu.memory_space<vmem>>, %arg7: memref<32x32xf32, #tpu.memory_space<vmem>>, %arg8: memref<1x32xf32, #tpu.memory_space<vmem>>, %arg9: memref<32x32xf32, #tpu.memory_space<vmem>>, %arg10: memref<1x32xf32, #tpu.memory_space<vmem>>, %arg11: memref<32x32xf32, #tpu.memory_space<vmem>>, %arg12: memref<1x32xf32, #tpu.memory_space<vmem>>, %arg13: memref<32x32xf32, #tpu.memory_space<vmem>>, %arg14: memref<1x32xf32, #tpu.memory_space<vmem>>, %arg15: memref<32x10xf32, #tpu.memory_space<vmem>>, %arg16: memref<1x10xf32, #tpu.memory_space<vmem>>, %arg17: memref<32x10xf32, #tpu.memory_space<vmem>>, %arg18: memref<1x10xf32, #tpu.memory_space<vmem>>, %arg19: memref<8x10xf32, #tpu.memory_space<vmem>>) attributes {dimension_semantics = [#tpu.dimension_semantics<parallel>], iteration_bounds = array<i64: 1>, scalar_prefetch = 0 : i64, scratch_operands = 0 : i64, tpu.core_type = #tpu.core_type<tc>, window_params = [{pipeline_mode = #tpu.pipeline_mode<synchronous>, transform_indices = @transform_0, window_bounds = array<i64: 8, 32>}, {pipeline_mode = #tpu.pipeline_mode<synchronous>, transform_indices = @transform_1, window_bounds = array<i64: 8, 32>}, {transform_indices = @transform_2, window_bounds = array<i64: 8, 32>}, {transform_indices = @transform_3, window_bounds = array<i64: 8, 32>}, {transform_indices = @transform_4, window_bounds = array<i64: 8, 32>}, {transform_indices = @transform_5, window_bounds = array<i64: 8, 10>}, {pipeline_mode = #tpu.pipeline_mode<synchronous>, transform_indices = @transform_6, window_bounds = array<i64: 32, 32>}, {pipeline_mode = #tpu.pipeline_mode<synchronous>, transform_indices = @transform_7, window_bounds = array<i64: 1, 32>}, {pipeline_mode = #tpu.pipeline_mode<synchronous>, transform_indices = @transform_8, window_bounds = array<i64: 32, 32>}, {pipeline_mode = #tpu.pipeline_mode<synchronous>, transform_indices = @transform_9, window_bounds = array<i64: 1, 32>}, {pipeline_mode = #tpu.pipeline_mode<synchronous>, transform_indices = @transform_10, window_bounds = array<i64: 32, 32>}, {pipeline_mode = #tpu.pipeline_mode<synchronous>, transform_indices = @transform_11, window_bounds = array<i64: 1, 32>}, {pipeline_mode = #tpu.pipeline_mode<synchronous>, transform_indices = @transform_12, window_bounds = array<i64: 32, 32>}, {pipeline_mode = #tpu.pipeline_mode<synchronous>, transform_indices = @transform_13, window_bounds = array<i64: 1, 32>}, {pipeline_mode = #tpu.pipeline_mode<synchronous>, transform_indices = @transform_14, window_bounds = array<i64: 32, 10>}, {pipeline_mode = #tpu.pipeline_mode<synchronous>, transform_indices = @transform_15, window_bounds = array<i64: 1, 10>}, {pipeline_mode = #tpu.pipeline_mode<synchronous>, transform_indices = @transform_16, window_bounds = array<i64: 32, 10>}, {pipeline_mode = #tpu.pipeline_mode<synchronous>, transform_indices = @transform_17, window_bounds = array<i64: 1, 10>}, {transform_indices = @transform_18, window_bounds = array<i64: 8, 10>}]} {
    %c0 = arith.constant 0 : index
    %c0_0 = arith.constant 0 : index
    %0 = vector.load %arg1[%c0, %c0_0] : memref<8x32xf32, #tpu.memory_space<vmem>>, vector<8x32xf32>
    %c0_1 = arith.constant 0 : index
    %c0_2 = arith.constant 0 : index
    %1 = vector.load %arg2[%c0_1, %c0_2] : memref<8x32xf32, #tpu.memory_space<vmem>>, vector<8x32xf32>
    %c0_3 = arith.constant 0 : index
    %c0_4 = arith.constant 0 : index
    %2 = vector.load %arg3[%c0_3, %c0_4] : memref<8x32xf32, #tpu.memory_space<vmem>>, vector<8x32xf32>
    %3 = arith.mulf %1, %2 : vector<8x32xf32>
    %4 = arith.addf %0, %3 : vector<8x32xf32>
    %cst = arith.constant 0.000000e+00 : f32
    %5 = vector.broadcast %cst : f32 to vector<8x32xf32>
    %6 = arith.cmpf oge, %4, %5 : vector<8x32xf32>
    %cst_5 = arith.constant 0.00999999977 : f32
    %7 = vector.broadcast %cst_5 : f32 to vector<8x32xf32>
    %8 = arith.mulf %7, %4 : vector<8x32xf32>
    %9 = arith.select %6, %4, %8 : vector<8x32xi1>, vector<8x32xf32>
    %c0_6 = arith.constant 0 : index
    %c0_7 = arith.constant 0 : index
    %10 = vector.load %arg4[%c0_6, %c0_7] : memref<8x32xf32, #tpu.memory_space<vmem>>, vector<8x32xf32>
    %c0_8 = arith.constant 0 : index
    %c0_9 = arith.constant 0 : index
    %11 = vector.load %arg7[%c0_8, %c0_9] : memref<32x32xf32, #tpu.memory_space<vmem>>, vector<32x32xf32>
    %cst_10 = arith.constant dense<0.000000e+00> : vector<8x32xf32>
    %12 = tpu.matmul %9, %11, %cst_10 {dimension_numbers = #tpu.dot_dimension_numbers<[1], [0], [0], [1], [0, 0, 1, 1], [], []>} : vector<8x32xf32>, vector<32x32xf32>, vector<8x32xf32> -> vector<8x32xf32>
    %c0_11 = arith.constant 0 : index
    %c0_12 = arith.constant 0 : index
    %13 = vector.load %arg8[%c0_11, %c0_12] : memref<1x32xf32, #tpu.memory_space<vmem>>, vector<1x32xf32>
    %14 = vector.broadcast %13 : vector<1x32xf32> to vector<8x32xf32>
    %15 = arith.addf %12, %14 : vector<8x32xf32>
    %16 = arith.mulf %9, %9 : vector<8x32xf32>
    %c0_13 = arith.constant 0 : index
    %c0_14 = arith.constant 0 : index
    %17 = vector.load %arg9[%c0_13, %c0_14] : memref<32x32xf32, #tpu.memory_space<vmem>>, vector<32x32xf32>
    %cst_15 = arith.constant dense<0.000000e+00> : vector<8x32xf32>
    %18 = tpu.matmul %16, %17, %cst_15 {dimension_numbers = #tpu.dot_dimension_numbers<[1], [0], [0], [1], [0, 0, 1, 1], [], []>} : vector<8x32xf32>, vector<32x32xf32>, vector<8x32xf32> -> vector<8x32xf32>
    %c0_16 = arith.constant 0 : index
    %c0_17 = arith.constant 0 : index
    %19 = vector.load %arg10[%c0_16, %c0_17] : memref<1x32xf32, #tpu.memory_space<vmem>>, vector<1x32xf32>
    %20 = vector.broadcast %19 : vector<1x32xf32> to vector<8x32xf32>
    %21 = arith.addf %18, %20 : vector<8x32xf32>
    %22 = math.sqrt %21 : vector<8x32xf32>
    %23 = arith.mulf %22, %10 : vector<8x32xf32>
    %24 = arith.addf %15, %23 : vector<8x32xf32>
    %cst_18 = arith.constant 0.000000e+00 : f32
    %25 = vector.broadcast %cst_18 : f32 to vector<8x32xf32>
    %26 = arith.cmpf oge, %24, %25 : vector<8x32xf32>
    %cst_19 = arith.constant 0.00999999977 : f32
    %27 = vector.broadcast %cst_19 : f32 to vector<8x32xf32>
    %28 = arith.mulf %27, %24 : vector<8x32xf32>
    %29 = arith.select %26, %24, %28 : vector<8x32xi1>, vector<8x32xf32>
    %c0_20 = arith.constant 0 : index
    %c0_21 = arith.constant 0 : index
    %30 = vector.load %arg5[%c0_20, %c0_21] : memref<8x32xf32, #tpu.memory_space<vmem>>, vector<8x32xf32>
    %c0_22 = arith.constant 0 : index
    %c0_23 = arith.constant 0 : index
    %31 = vector.load %arg11[%c0_22, %c0_23] : memref<32x32xf32, #tpu.memory_space<vmem>>, vector<32x32xf32>
    %cst_24 = arith.constant dense<0.000000e+00> : vector<8x32xf32>
    %32 = tpu.matmul %29, %31, %cst_24 {dimension_numbers = #tpu.dot_dimension_numbers<[1], [0], [0], [1], [0, 0, 1, 1], [], []>} : vector<8x32xf32>, vector<32x32xf32>, vector<8x32xf32> -> vector<8x32xf32>
    %c0_25 = arith.constant 0 : index
    %c0_26 = arith.constant 0 : index
    %33 = vector.load %arg12[%c0_25, %c0_26] : memref<1x32xf32, #tpu.memory_space<vmem>>, vector<1x32xf32>
    %34 = vector.broadcast %33 : vector<1x32xf32> to vector<8x32xf32>
    %35 = arith.addf %32, %34 : vector<8x32xf32>
    %36 = arith.mulf %29, %29 : vector<8x32xf32>
    %c0_27 = arith.constant 0 : index
    %c0_28 = arith.constant 0 : index
    %37 = vector.load %arg13[%c0_27, %c0_28] : memref<32x32xf32, #tpu.memory_space<vmem>>, vector<32x32xf32>
    %cst_29 = arith.constant dense<0.000000e+00> : vector<8x32xf32>
    %38 = tpu.matmul %36, %37, %cst_29 {dimension_numbers = #tpu.dot_dimension_numbers<[1], [0], [0], [1], [0, 0, 1, 1], [], []>} : vector<8x32xf32>, vector<32x32xf32>, vector<8x32xf32> -> vector<8x32xf32>
    %c0_30 = arith.constant 0 : index
    %c0_31 = arith.constant 0 : index
    %39 = vector.load %arg14[%c0_30, %c0_31] : memref<1x32xf32, #tpu.memory_space<vmem>>, vector<1x32xf32>
    %40 = vector.broadcast %39 : vector<1x32xf32> to vector<8x32xf32>
    %41 = arith.addf %38, %40 : vector<8x32xf32>
    %42 = math.sqrt %41 : vector<8x32xf32>
    %43 = arith.mulf %42, %30 : vector<8x32xf32>
    %44 = arith.addf %35, %43 : vector<8x32xf32>
    %cst_32 = arith.constant 0.000000e+00 : f32
    %45 = vector.broadcast %cst_32 : f32 to vector<8x32xf32>
    %46 = arith.cmpf oge, %44, %45 : vector<8x32xf32>
    %cst_33 = arith.constant 0.00999999977 : f32
    %47 = vector.broadcast %cst_33 : f32 to vector<8x32xf32>
    %48 = arith.mulf %47, %44 : vector<8x32xf32>
    %49 = arith.select %46, %44, %48 : vector<8x32xi1>, vector<8x32xf32>
    %c0_34 = arith.constant 0 : index
    %c0_35 = arith.constant 0 : index
    %50 = vector.load %arg6[%c0_34, %c0_35] : memref<8x10xf32, #tpu.memory_space<vmem>>, vector<8x10xf32>
    %c0_36 = arith.constant 0 : index
    %c0_37 = arith.constant 0 : index
    %51 = vector.load %arg15[%c0_36, %c0_37] : memref<32x10xf32, #tpu.memory_space<vmem>>, vector<32x10xf32>
    %cst_38 = arith.constant dense<0.000000e+00> : vector<8x10xf32>
    %52 = tpu.matmul %49, %51, %cst_38 {dimension_numbers = #tpu.dot_dimension_numbers<[1], [0], [0], [1], [0, 0, 1, 1], [], []>} : vector<8x32xf32>, vector<32x10xf32>, vector<8x10xf32> -> vector<8x10xf32>
    %c0_39 = arith.constant 0 : index
    %c0_40 = arith.constant 0 : index
    %53 = vector.load %arg16[%c0_39, %c0_40] : memref<1x10xf32, #tpu.memory_space<vmem>>, vector<1x10xf32>
    %54 = vector.broadcast %53 : vector<1x10xf32> to vector<8x10xf32>
    %55 = arith.addf %52, %54 : vector<8x10xf32>
    %56 = arith.mulf %49, %49 : vector<8x32xf32>
    %c0_41 = arith.constant 0 : index
    %c0_42 = arith.constant 0 : index
    %57 = vector.load %arg17[%c0_41, %c0_42] : memref<32x10xf32, #tpu.memory_space<vmem>>, vector<32x10xf32>
    %cst_43 = arith.constant dense<0.000000e+00> : vector<8x10xf32>
    %58 = tpu.matmul %56, %57, %cst_43 {dimension_numbers = #tpu.dot_dimension_numbers<[1], [0], [0], [1], [0, 0, 1, 1], [], []>} : vector<8x32xf32>, vector<32x10xf32>, vector<8x10xf32> -> vector<8x10xf32>
    %c0_44 = arith.constant 0 : index
    %c0_45 = arith.constant 0 : index
    %59 = vector.load %arg18[%c0_44, %c0_45] : memref<1x10xf32, #tpu.memory_space<vmem>>, vector<1x10xf32>
    %60 = vector.broadcast %59 : vector<1x10xf32> to vector<8x10xf32>
    %61 = arith.addf %58, %60 : vector<8x10xf32>
    %62 = math.sqrt %61 : vector<8x10xf32>
    %63 = arith.mulf %62, %50 : vector<8x10xf32>
    %64 = arith.addf %55, %63 : vector<8x10xf32>
    %cst_46 = arith.constant dense<0xFF800000> : vector<8xf32>
    %65 = vector.multi_reduction <maximumf>, %64, %cst_46 [1] : vector<8x10xf32> to vector<8xf32>
    %66 = vector.shape_cast %65 : vector<8xf32> to vector<8x1xf32>
    %67 = vector.broadcast %66 : vector<8x1xf32> to vector<8x10xf32>
    %68 = arith.subf %64, %67 : vector<8x10xf32>
    %69 = math.exp %68 : vector<8x10xf32>
    %cst_47 = arith.constant dense<0.000000e+00> : vector<8xf32>
    %70 = vector.multi_reduction <add>, %69, %cst_47 [1] : vector<8x10xf32> to vector<8xf32>
    %71 = vector.shape_cast %70 : vector<8xf32> to vector<8x1xf32>
    %72 = math.log %71 : vector<8x1xf32>
    %73 = vector.broadcast %72 : vector<8x1xf32> to vector<8x10xf32>
    %74 = arith.subf %68, %73 : vector<8x10xf32>
    %c0_48 = arith.constant 0 : index
    %c0_49 = arith.constant 0 : index
    %75 = vector.load %arg19[%c0_48, %c0_49] : memref<8x10xf32, #tpu.memory_space<vmem>>, vector<8x10xf32>
    tpu.vector_store %arg19[%c0_48, %c0_49], %74 {strides = array<i32>} : memref<8x10xf32, #tpu.memory_space<vmem>>, vector<8x10xf32>,
    return
  }
  func.func @transform_0(%arg0: i32) -> (i32, i32) {
    %c0_i32 = arith.constant 0 : i32
    %c0_i32_0 = arith.constant 0 : i32
    %c0_i32_1 = arith.constant 0 : i32
    return %c0_i32, %c0_i32_0 : i32, i32
  }
  func.func @transform_1(%arg0: i32) -> (i32, i32) {
    %c0_i32 = arith.constant 0 : i32
    %c0_i32_0 = arith.constant 0 : i32
    %c0_i32_1 = arith.constant 0 : i32
    return %c0_i32, %c0_i32_0 : i32, i32
  }
  func.func @transform_2(%arg0: i32) -> (i32, i32) {
    %c0_i32 = arith.constant 0 : i32
    %c0_i32_0 = arith.constant 0 : i32
    return %arg0, %c0_i32 : i32, i32
  }
  func.func @transform_3(%arg0: i32) -> (i32, i32) {
    %c0_i32 = arith.constant 0 : i32
    %c0_i32_0 = arith.constant 0 : i32
    return %arg0, %c0_i32 : i32, i32
  }
  func.func @transform_4(%arg0: i32) -> (i32, i32) {
    %c0_i32 = arith.constant 0 : i32
    %c0_i32_0 = arith.constant 0 : i32
    return %arg0, %c0_i32 : i32, i32
  }
  func.func @transform_5(%arg0: i32) -> (i32, i32) {
    %c0_i32 = arith.constant 0 : i32
    %c0_i32_0 = arith.constant 0 : i32
    return %arg0, %c0_i32 : i32, i32
  }
  func.func @transform_6(%arg0: i32) -> (i32, i32) {
    %c0_i32 = arith.constant 0 : i32
    %c0_i32_0 = arith.constant 0 : i32
    %c0_i32_1 = arith.constant 0 : i32
    return %c0_i32, %c0_i32_0 : i32, i32
  }
  func.func @transform_7(%arg0: i32) -> (i32, i32) {
    %c0_i32 = arith.constant 0 : i32
    %c0_i32_0 = arith.constant 0 : i32
    %c0_i32_1 = arith.constant 0 : i32
    return %c0_i32, %c0_i32_0 : i32, i32
  }
  func.func @transform_8(%arg0: i32) -> (i32, i32) {
    %c0_i32 = arith.constant 0 : i32
    %c0_i32_0 = arith.constant 0 : i32
    %c0_i32_1 = arith.constant 0 : i32
    return %c0_i32, %c0_i32_0 : i32, i32
  }
  func.func @transform_9(%arg0: i32) -> (i32, i32) {
    %c0_i32 = arith.constant 0 : i32
    %c0_i32_0 = arith.constant 0 : i32
    %c0_i32_1 = arith.constant 0 : i32
    return %c0_i32, %c0_i32_0 : i32, i32
  }
  func.func @transform_10(%arg0: i32) -> (i32, i32) {
    %c0_i32 = arith.constant 0 : i32
    %c0_i32_0 = arith.constant 0 : i32
    %c0_i32_1 = arith.constant 0 : i32
    return %c0_i32, %c0_i32_0 : i32, i32
  }
  func.func @transform_11(%arg0: i32) -> (i32, i32) {
    %c0_i32 = arith.constant 0 : i32
    %c0_i32_0 = arith.constant 0 : i32
    %c0_i32_1 = arith.constant 0 : i32
    return %c0_i32, %c0_i32_0 : i32, i32
  }
  func.func @transform_12(%arg0: i32) -> (i32, i32) {
    %c0_i32 = arith.constant 0 : i32
    %c0_i32_0 = arith.constant 0 : i32
    %c0_i32_1 = arith.constant 0 : i32
    return %c0_i32, %c0_i32_0 : i32, i32
  }
  func.func @transform_13(%arg0: i32) -> (i32, i32) {
    %c0_i32 = arith.constant 0 : i32
    %c0_i32_0 = arith.constant 0 : i32
    %c0_i32_1 = arith.constant 0 : i32
    return %c0_i32, %c0_i32_0 : i32, i32
  }
  func.func @transform_14(%arg0: i32) -> (i32, i32) {
    %c0_i32 = arith.constant 0 : i32
    %c0_i32_0 = arith.constant 0 : i32
    %c0_i32_1 = arith.constant 0 : i32
    return %c0_i32, %c0_i32_0 : i32, i32
  }
  func.func @transform_15(%arg0: i32) -> (i32, i32) {
    %c0_i32 = arith.constant 0 : i32
    %c0_i32_0 = arith.constant 0 : i32
    %c0_i32_1 = arith.constant 0 : i32
    return %c0_i32, %c0_i32_0 : i32, i32
  }
  func.func @transform_16(%arg0: i32) -> (i32, i32) {
    %c0_i32 = arith.constant 0 : i32
    %c0_i32_0 = arith.constant 0 : i32
    %c0_i32_1 = arith.constant 0 : i32
    return %c0_i32, %c0_i32_0 : i32, i32
  }
  func.func @transform_17(%arg0: i32) -> (i32, i32) {
    %c0_i32 = arith.constant 0 : i32
    %c0_i32_0 = arith.constant 0 : i32
    %c0_i32_1 = arith.constant 0 : i32
    return %c0_i32, %c0_i32_0 : i32, i32
  }
  func.func @transform_18(%arg0: i32) -> (i32, i32) {
    %c0_i32 = arith.constant 0 : i32
    %c0_i32_0 = arith.constant 0 : i32
    return %arg0, %c0_i32 : i32, i32
  }
}

</mosaic_0001>

<bundles_post_ra>
// kernel: square.7
= control target key start
LH: loop header
LB: loop body
LE: loop exit
PB: predicated region body
PF: predicated region fallthrough
CT: control target
= control target key end

     0   :  { %s56_s0 = inlined_call_operand.vmem [shape: f32[33,10], index: 0, kind: input, shape index: {}, may-alias: {0,1}]   ;;  %s57_s1 = inlined_call_operand.vmem [shape: f32[33,10], index: 1, kind: input, shape index: {}, may-alias: {0,1}]   ;;  %s58_s2 = inlined_call_operand.vmem [shape: f32[33,10], index: 2, kind: output, shape index: {}]  }
   0x1   :  { %v3_v0 = vld [vmem:[%s56_s0] sm:$0xff]  ;;  %v20_v2 = vld [vmem:[%s56_s0 + $0x8] sm:$0xff] }
   0x2   :  { %v4_v1 = vld [vmem:[%s57_s1] sm:$0xff]  ;;  %v21_v4 = vld [vmem:[%s57_s1 + $0x8] sm:$0xff] }
   0x3   :  { %v7_v3 = vmul.f32 %v4_v1, %v3_v0  ;;  %v16_v5 = vmul.f32 %v21_v4, %v20_v2 }
   0x5   :  { %9 = vst [vmem:[%s58_s2] sm:$0xff] %v7_v3  ;;  %22 = vst [vmem:[%s58_s2 + $0x8] sm:$0xff] %v16_v5 }

// kernel: bnn_forward.4
= control target key start
LH: loop header
LB: loop body
LE: loop exit
PB: predicated region body
PF: predicated region fallthrough
CT: control target
= control target key end

     0   :  { %v1319_v47 = vmov 1983009808   ;;  %v122_v49 = vlaneseq  ;;  %vm1321_vm0 = vmmov 0   ;;  %vm157_vm1 = vcmask 130048   ;;  %s2005_s1 = inlined_call_operand.vmem [shape: f32[784,32], index: 1, kind: input, shape index: {}]   ;;  %s2006_s0 = inlined_call_operand.vmem [shape: f32[2,784], index: 0, kind: input, shape index: {}]   ;;  %s2007_s2 = inlined_call_operand.vmem [shape: f32[784,32], index: 2, kind: input, shape index: {}]   ;;  %s2008_s3 = inlined_call_operand.vmem [shape: f32[2,32], index: 3, kind: output, shape index: {0}]   ;;  %s2009_s4 = inlined_call_operand.vmem [shape: f32[2,32], index: 4, kind: output, shape index: {1}]  }
   0x1   :  { %v34_v0 = vld [vmem:[%s2005_s1 + $0x80] sm:$0xff]  ;;  %v35_v1 = vld [vmem:[%s2005_s1 + $0x88] sm:$0xff]  ;;  %v36_v11 = vld [vmem:[%s2005_s1 + $0x90] sm:$0xff]  ;;  %v120_v48 = vunpack.c.l.s4 %v1319_v47  ;;  %vm440_vm2 = vcmask 254976  }
   0x2   :  { %v66_v2 = vld [vmem:[%s2005_s1 + $0x180] sm:$0xff]  ;;  %v1113_v3 = vpack.c.bf16 %v35_v1, %v34_v0  ;;  %v67_v4 = vld [vmem:[%s2005_s1 + $0x188] sm:$0xff]  ;;  %v37_v13 = vld [vmem:[%s2005_s1 + $0x98] sm:$0xff]  ;;  %v123_v0 = vshrl.u32 %v122_v49, 7 }
   0x3   :  { %v18_v5 = vld [vmem:[%s2005_s1] sm:$0xff]  ;;  %v19_v6 = vld [vmem:[%s2005_s1 + $0x8] sm:$0xff]  ;;  %v1145_v7 = vpack.c.bf16 %v67_v4, %v66_v2  ;;  %v68_v14 = vld [vmem:[%s2005_s1 + $0x190] sm:$0xff]  ;;  %v1117_v16 = vpack.c.bf16 %v37_v13, %v36_v11  ;;  %v121_v63 = vunpack.c.0.s8 %v120_v48 }
   0x4   :  { %v1115_v8 = vpack.c.bf16 %v19_v6, %v18_v5  ;;  %v50_v9 = vld [vmem:[%s2005_s1 + $0x100] sm:$0xff]  ;;  %v51_v10 = vld [vmem:[%s2005_s1 + $0x108] sm:$0xff]  ;;  %1114 = vmatprep.subr.bf16.mxu0 %v1113_v3  ;;  %v69_v15 = vld [vmem:[%s2005_s1 + $0x198] sm:$0xff] }
   0x5   :  { %v1147_v12 = vpack.c.bf16 %v51_v10, %v50_v9  ;;  %1146 = vmatprep.subr.bf16.mxu1 %v1145_v7  ;;  %v1149_v17 = vpack.c.bf16 %v69_v15, %v68_v14  ;;  %v20_v18 = vld [vmem:[%s2005_s1 + $0x10] sm:$0xff]  ;;  %v21_v19 = vld [vmem:[%s2005_s1 + $0x18] sm:$0xff]  ;;  %v38_v23 = vld [vmem:[%s2005_s1 + $0xa0] sm:$0xff]  ;;  %v1498_v13 = vsub.s32 %v121_v63, %v123_v0  ;;  %v1320_v0 = vmov 0.0|0.0  }
   0x6   :  { %1116 = vmatpush3.bf16.msra.mxu0 %v1115_v8  ;;  %v52_v20 = vld [vmem:[%s2005_s1 + $0x110] sm:$0xff]  ;;  %v1119_v21 = vpack.c.bf16 %v21_v19, %v20_v18  ;;  %v53_v22 = vld [vmem:[%s2005_s1 + $0x118] sm:$0xff]  ;;  %v39_v24 = vld [vmem:[%s2005_s1 + $0xa8] sm:$0xff] }
   0x7   :  { %1148 = vmatpush3.bf16.msra.mxu1 %v1147_v12  ;;  %1118 = vmatprep.subr.bf16.mxu0 %v1117_v16  ;;  %v1151_v25 = vpack.c.bf16 %v53_v22, %v52_v20  ;;  %v1121_v26 = vpack.c.bf16 %v39_v24, %v38_v23  ;;  %v70_v27 = vld [vmem:[%s2005_s1 + $0x1a0] sm:$0xff]  ;;  %v71_v28 = vld [vmem:[%s2005_s1 + $0x1a8] sm:$0xff]  ;;  %v40_v35 = vld [vmem:[%s2005_s1 + $0xb0] sm:$0xff] }
   0x8   :  { %1150 = vmatprep.subr.bf16.mxu1 %v1149_v17  ;;  %v22_v29 = vld [vmem:[%s2005_s1 + $0x20] sm:$0xff]  ;;  %v1153_v30 = vpack.c.bf16 %v71_v28, %v70_v27  ;;  %v23_v31 = vld [vmem:[%s2005_s1 + $0x28] sm:$0xff]  ;;  %v41_v36 = vld [vmem:[%s2005_s1 + $0xb8] sm:$0xff] }
   0x9   :  { %v54_v32 = vld [vmem:[%s2005_s1 + $0x120] sm:$0xff]  ;;  %v55_v33 = vld [vmem:[%s2005_s1 + $0x128] sm:$0xff]  ;;  %v1123_v34 = vpack.c.bf16 %v23_v31, %v22_v29  ;;  %v72_v37 = vld [vmem:[%s2005_s1 + $0x1b0] sm:$0xff]  ;;  %v1125_v39 = vpack.c.bf16 %v41_v36, %v40_v35 }
   0xa   :  { %1120 = vmatpush3.bf16.msra.mxu0 %v1119_v21  ;;  %v1155_v38 = vpack.c.bf16 %v55_v33, %v54_v32  ;;  %v73_v40 = vld [vmem:[%s2005_s1 + $0x1b8] sm:$0xff]  ;;  %v24_v41 = vld [vmem:[%s2005_s1 + $0x30] sm:$0xff]  ;;  %v42_v46 = vld [vmem:[%s2005_s1 + $0xc0] sm:$0xff] }
   0xb   :  { %1152 = vmatpush3.bf16.msra.mxu1 %v1151_v25  ;;  %1122 = vmatprep.subr.bf16.mxu0 %v1121_v26  ;;  %v25_v42 = vld [vmem:[%s2005_s1 + $0x38] sm:$0xff]  ;;  %v1157_v43 = vpack.c.bf16 %v73_v40, %v72_v37  ;;  %v56_v44 = vld [vmem:[%s2005_s1 + $0x130] sm:$0xff]  ;;  %v43_v50 = vld [vmem:[%s2005_s1 + $0xc8] sm:$0xff] }
   0xc   :  { %1154 = vmatprep.subr.bf16.mxu1 %v1153_v30  ;;  %v57_v45 = vld [vmem:[%s2005_s1 + $0x138] sm:$0xff]  ;;  %v74_v51 = vld [vmem:[%s2005_s1 + $0x1c0] sm:$0xff]  ;;  %v75_v52 = vld [vmem:[%s2005_s1 + $0x1c8] sm:$0xff]  ;;  %v1127_v53 = vpack.c.bf16 %v25_v42, %v24_v41  ;;  %v1129_v55 = vpack.c.bf16 %v43_v50, %v42_v46 }
   0xd   :  { %v1159_v54 = vpack.c.bf16 %v57_v45, %v56_v44  ;;  %v26_v56 = vld [vmem:[%s2005_s1 + $0x40] sm:$0xff]  ;;  %v27_v57 = vld [vmem:[%s2005_s1 + $0x48] sm:$0xff]  ;;  %v1161_v59 = vpack.c.bf16 %v75_v52, %v74_v51  ;;  %v44_v61 = vld [vmem:[%s2005_s1 + $0xd0] sm:$0xff] }
   0xe   :  { %1124 = vmatpush3.bf16.msra.mxu0 %v1123_v34  ;;  %v58_v58 = vld [vmem:[%s2005_s1 + $0x140] sm:$0xff]  ;;  %v59_v60 = vld [vmem:[%s2005_s1 + $0x148] sm:$0xff]  ;;  %v45_v62 = vld [vmem:[%s2005_s1 + $0xd8] sm:$0xff]  ;;  %v1131_v3 = vpack.c.bf16 %v27_v57, %v26_v56 }
   0xf   :  { %1156 = vmatpush3.bf16.msra.mxu1 %v1155_v38  ;;  %1126 = vmatprep.subr.bf16.mxu0 %v1125_v39  ;;  %v76_v1 = vld [vmem:[%s2005_s1 + $0x1d0] sm:$0xff]  ;;  %v77_v2 = vld [vmem:[%s2005_s1 + $0x1d8] sm:$0xff]  ;;  %v1163_v4 = vpack.c.bf16 %v59_v60, %v58_v58  ;;  %v1133_v5 = vpack.c.bf16 %v45_v62, %v44_v61  ;;  %v46_v11 = vld [vmem:[%s2005_s1 + $0xe0] sm:$0xff] }
  0x10   :  { %1158 = vmatprep.subr.bf16.mxu1 %v1157_v43  ;;  %v28_v6 = vld [vmem:[%s2005_s1 + $0x50] sm:$0xff]  ;;  %v29_v7 = vld [vmem:[%s2005_s1 + $0x58] sm:$0xff]  ;;  %v1165_v9 = vpack.c.bf16 %v77_v2, %v76_v1  ;;  %v47_v12 = vld [vmem:[%s2005_s1 + $0xe8] sm:$0xff] }
  0x11   :  { %v60_v8 = vld [vmem:[%s2005_s1 + $0x150] sm:$0xff]  ;;  %v61_v10 = vld [vmem:[%s2005_s1 + $0x158] sm:$0xff]  ;;  %v78_v14 = vld [vmem:[%s2005_s1 + $0x1e0] sm:$0xff]  ;;  %v1135_v16 = vpack.c.bf16 %v29_v7, %v28_v6  ;;  %v1137_v19 = vpack.c.bf16 %v47_v12, %v46_v11  ;;  %v1322_v12 = vmov 0.0  }
  0x12   :  { %1128 = vmatpush3.bf16.msra.mxu0 %v1127_v53  ;;  %v79_v15 = vld [vmem:[%s2005_s1 + $0x1e8] sm:$0xff]  ;;  %v30_v17 = vld [vmem:[%s2005_s1 + $0x60] sm:$0xff]  ;;  %v1167_v18 = vpack.c.bf16 %v61_v10, %v60_v8  ;;  %v48_v25 = vld [vmem:[%s2005_s1 + $0xf0] sm:$0xff] }
  0x13   :  { %1160 = vmatpush3.bf16.msra.mxu1 %v1159_v54  ;;  %1130 = vmatprep.subr.bf16.mxu0 %v1129_v55  ;;  %v31_v20 = vld [vmem:[%s2005_s1 + $0x68] sm:$0xff]  ;;  %v62_v21 = vld [vmem:[%s2005_s1 + $0x160] sm:$0xff]  ;;  %v1169_v23 = vpack.c.bf16 %v79_v15, %v78_v14  ;;  %v49_v26 = vld [vmem:[%s2005_s1 + $0xf8] sm:$0xff] }
  0x14   :  { %1162 = vmatprep.subr.bf16.mxu1 %v1161_v59  ;;  %v16_v22 = vld [vmem:[%s2006_s0] sm:$0xff]  ;;  %v63_v24 = vld [vmem:[%s2005_s1 + $0x168] sm:$0xff]  ;;  %v80_v28 = vld [vmem:[%s2005_s1 + $0x1f0] sm:$0xff]  ;;  %v1139_v31 = vpack.c.bf16 %v31_v20, %v30_v17  ;;  %v1141_v34 = vpack.c.bf16 %v49_v26, %v48_v25 }
  0x15   :  { %v125_v27 = vrot.slane %v16_v22, %v1498_v13  ;;  %v81_v29 = vld [vmem:[%s2005_s1 + $0x1f8] sm:$0xff]  ;;  %v118_v30 = vcombine.high %v16_v22, %v16_v22  ;;  %v1171_v33 = vpack.c.bf16 %v63_v24, %v62_v21  ;;  %v32_v35 = vld [vmem:[%s2005_s1 + $0x70] sm:$0xff]  ;;  %v98_v41 = vld [vmem:[%s2005_s1 + $0x280] sm:$0xff]  ;;  %v1564_v50 = vmul.f32 %v16_v22, %v16_v22 }
  0x16   :  { %1132 = vmatpush3.bf16.msra.mxu0 %v1131_v3  ;;  %v33_v36 = vld [vmem:[%s2005_s1 + $0x78] sm:$0xff]  ;;  %v64_v37 = vld [vmem:[%s2005_s1 + $0x170] sm:$0xff]  ;;  %v1173_v39 = vpack.c.bf16 %v81_v29, %v80_v28  ;;  %v99_v42 = vld [vmem:[%s2005_s1 + $0x288] sm:$0xff] }
  0x17   :  { %1164 = vmatpush3.bf16.msra.mxu1 %v1163_v4  ;;  %1134 = vmatprep.subr.bf16.mxu0 %v1133_v5  ;;  %v133_v32 = vcombine.high %v125_v27, %v125_v27  ;;  %v132_v38 = vrot.slane %v118_v30, %v1498_v13  ;;  %v65_v40 = vld [vmem:[%s2005_s1 + $0x178] sm:$0xff]  ;;  %v1143_v44 = vpack.c.bf16 %v33_v36, %v32_v35  ;;  %v1556_v46 = vld [vmem:[%s2006_s0 + $0x8] sm:$0x3f]  ;;  %v82_v48 = vld [vmem:[%s2005_s1 + $0x200] sm:$0xff] }
  0x18   :  { %1166 = vmatprep.subr.bf16.mxu1 %v1165_v9  ;;  %v1175_v45 = vpack.c.bf16 %v65_v40, %v64_v37  ;;  %v1177_v47 = vpack.c.bf16 %v99_v42, %v98_v41  ;;  %v83_v49 = vld [vmem:[%s2005_s1 + $0x208] sm:$0xff]  ;;  %v114_v51 = vld [vmem:[%s2005_s1 + $0x300] sm:$0xff]  ;;  %v100_v53 = vld [vmem:[%s2005_s1 + $0x290] sm:$0xff]  ;;  %v1586_v57 = vrot.slane %v1556_v46, %v1498_v13  ;;  %v135_v58 = vcombine.high %v1556_v46, %v1556_v46 }
  0x19   :  { %224 = vmatprep.mubr.f32.mxu0 %v133_v32  ;;  %v134_v43 = vcombine.high %v132_v38, %v132_v38  ;;  %v115_v52 = vld [vmem:[%s2005_s1 + $0x308] sm:$0xff]  ;;  %v101_v54 = vld [vmem:[%s2005_s1 + $0x298] sm:$0xff]  ;;  %v460_v55 = vld [vmem:[%s2007_s2 + $0x80] sm:$0xff]  ;;  %v1179_v59 = vpack.c.bf16 %v83_v49, %v82_v48  ;;  %v1611_v6 = vrot.slane %v1564_v50, %v1498_v13 }
  0x1a   :  { %1136 = vmatpush3.bf16.msra.mxu0 %v1135_v16  ;;  %v461_v56 = vld [vmem:[%s2007_s2 + $0x88] sm:$0xff]  ;;  %v1210_v60 = vpack.c.bf16 %v115_v52, %v114_v51  ;;  %v84_v61 = vld [vmem:[%s2005_s1 + $0x210] sm:$0xff]  ;;  %v85_v62 = vld [vmem:[%s2005_s1 + $0x218] sm:$0xff]  ;;  %v1181_v1 = vpack.c.bf16 %v101_v54, %v100_v53  ;;  %v150_v9 = vcombine.high %v1586_v57, %v1586_v57  ;;  %v149_v10 = vrot.slane %v135_v58, %v1498_v13 }
  0x1b   :  { %1168 = vmatpush3.bf16.msra.mxu1 %v1167_v18  ;;  %1138 = vmatprep.subr.bf16.mxu0 %v1137_v19  ;;  %v444_v63 = vld [vmem:[%s2007_s2] sm:$0xff]  ;;  %v1212_v2 = vpack.c.bf16 %v461_v56, %v460_v55  ;;  %v445_v3 = vld [vmem:[%s2007_s2 + $0x8] sm:$0xff]  ;;  %v462_v7 = vld [vmem:[%s2007_s2 + $0x90] sm:$0xff]  ;;  %v1183_v11 = vpack.c.bf16 %v85_v62, %v84_v61 }
  0x1c   :  { %1170 = vmatprep.subr.bf16.mxu1 %v1169_v23  ;;  %294 = vmatprep.mubr.f32.mxu1 %v134_v43  ;;  %v102_v4 = vld [vmem:[%s2005_s1 + $0x2a0] sm:$0xff]  ;;  %v103_v5 = vld [vmem:[%s2005_s1 + $0x2a8] sm:$0xff]  ;;  %v463_v8 = vld [vmem:[%s2007_s2 + $0x98] sm:$0xff]  ;;  %v1214_v14 = vpack.c.bf16 %v445_v3, %v444_v63  ;;  %v559_v23 = vcombine.high %v1611_v6, %v1611_v6 }
  0x1d   :  { %v1185_v15 = vpack.c.bf16 %v103_v5, %v102_v4  ;;  %v86_v16 = vld [vmem:[%s2005_s1 + $0x220] sm:$0xff]  ;;  %v87_v17 = vld [vmem:[%s2005_s1 + $0x228] sm:$0xff]  ;;  %v446_v18 = vld [vmem:[%s2007_s2 + $0x10] sm:$0xff]  ;;  %v1216_v19 = vpack.c.bf16 %v463_v8, %v462_v7 }
  0x1e   :  { %1140 = vmatpush3.bf16.msra.mxu0 %v1139_v31  ;;  %v447_v20 = vld [vmem:[%s2007_s2 + $0x18] sm:$0xff]  ;;  %v104_v21 = vld [vmem:[%s2005_s1 + $0x2b0] sm:$0xff]  ;;  %v464_v24 = vld [vmem:[%s2007_s2 + $0xa0] sm:$0xff]  ;;  %v1187_v26 = vpack.c.bf16 %v87_v17, %v86_v16 }
  0x1f   :  { %1172 = vmatpush3.bf16.msra.mxu1 %v1171_v33  ;;  %1142 = vmatprep.subr.bf16.mxu0 %v1141_v34  ;;  %v105_v22 = vld [vmem:[%s2005_s1 + $0x2b8] sm:$0xff]  ;;  %v465_v25 = vld [vmem:[%s2007_s2 + $0xa8] sm:$0xff]  ;;  %v88_v29 = vld [vmem:[%s2005_s1 + $0x230] sm:$0xff] }
  0x20   :  { %1174 = vmatprep.subr.bf16.mxu1 %v1173_v39  ;;  %v1189_v28 = vpack.c.bf16 %v105_v22, %v104_v21  ;;  %v89_v30 = vld [vmem:[%s2005_s1 + $0x238] sm:$0xff]  ;;  %v448_v31 = vld [vmem:[%s2007_s2 + $0x20] sm:$0xff]  ;;  %v1220_v32 = vpack.c.bf16 %v465_v25, %v464_v24  ;;  %v449_v33 = vld [vmem:[%s2007_s2 + $0x28] sm:$0xff] }
  0x21   :  { %v106_v34 = vld [vmem:[%s2005_s1 + $0x2c0] sm:$0xff]  ;;  %v107_v35 = vld [vmem:[%s2005_s1 + $0x2c8] sm:$0xff]  ;;  %v466_v36 = vld [vmem:[%s2007_s2 + $0xb0] sm:$0xff]  ;;  %v1222_v39 = vpack.c.bf16 %v449_v33, %v448_v31 }
  0x22   :  { %1144 = vmatpush3.bf16.msra.mxu0 %v1143_v44  ;;  %v467_v37 = vld [vmem:[%s2007_s2 + $0xb8] sm:$0xff]  ;;  %v1193_v40 = vpack.c.bf16 %v107_v35, %v106_v34  ;;  %v90_v41 = vld [vmem:[%s2005_s1 + $0x240] sm:$0xff]  ;;  %v91_v42 = vld [vmem:[%s2005_s1 + $0x248] sm:$0xff] }
  0x23   :  { %1176 = vmatpush3.bf16.msra.mxu1 %v1175_v45  ;;  %1178 = vmatprep.subr.bf16.mxu0 %v1177_v47  ;;  %v450_v43 = vld [vmem:[%s2007_s2 + $0x30] sm:$0xff]  ;;  %v1224_v44 = vpack.c.bf16 %v467_v37, %v466_v36  ;;  %v451_v45 = vld [vmem:[%s2007_s2 + $0x38] sm:$0xff]  ;;  %v468_v49 = vld [vmem:[%s2007_s2 + $0xc0] sm:$0xff]  ;;  %v1195_v52 = vpack.c.bf16 %v91_v42, %v90_v41 }
  0x24   :  { %1209 = vmatprep.subr.bf16.mxu1 %v1320_v0  ;;  %v108_v47 = vld [vmem:[%s2005_s1 + $0x2d0] sm:$0xff]  ;;  %v109_v48 = vld [vmem:[%s2005_s1 + $0x2d8] sm:$0xff]  ;;  %v469_v51 = vld [vmem:[%s2007_s2 + $0xc8] sm:$0xff]  ;;  %v1226_v53 = vpack.c.bf16 %v451_v45, %v450_v43 }
  0x25   :  { %225 = vmatmul.mubr.f32.vlgmr.msra.gmra.mrb[0].mxu0 %v125_v27  ;;  %v1218_v27 = vpack.c.bf16 %v447_v20, %v446_v18  ;;  %v1197_v54 = vpack.c.bf16 %v109_v48, %v108_v47  ;;  %v92_v55 = vld [vmem:[%s2005_s1 + $0x250] sm:$0xff]  ;;  %v93_v56 = vld [vmem:[%s2005_s1 + $0x258] sm:$0xff]  ;;  %v452_v58 = vld [vmem:[%s2007_s2 + $0x40] sm:$0xff]  ;;  %v544_v18 = vcombine.high %v1564_v50, %v1564_v50 }
  0x26   :  { %295 = vmatmul.mubr.f32.vlgmr.msra.gmra.mrb[0].mxu1 %v132_v38  ;;  %1180 = vmatpush3.bf16.msra.mxu0 %v1179_v59  ;;  %v1191_v38 = vpack.c.bf16 %v89_v30, %v88_v29  ;;  %v1228_v59 = vpack.c.bf16 %v469_v51, %v468_v49  ;;  %v110_v61 = vld [vmem:[%s2005_s1 + $0x2e0] sm:$0xff]  ;;  %v111_v62 = vld [vmem:[%s2005_s1 + $0x2e8] sm:$0xff]  ;;  %v470_v63 = vld [vmem:[%s2007_s2 + $0xd0] sm:$0xff] }
  0x27   :  { %1211 = vmatpush3.bf16.msra.mxu1 %v1210_v60  ;;  %1103 = vmatprep.mubr.msk.f32.mxu1 %vm1321_vm0, %v1322_v12  ;;  %v453_v60 = vld [vmem:[%s2007_s2 + $0x48] sm:$0xff]  ;;  %v1201_v4 = vpack.c.bf16 %v111_v62, %v110_v61  ;;  %v94_v5 = vld [vmem:[%s2005_s1 + $0x260] sm:$0xff]  ;;  %v454_v8 = vld [vmem:[%s2007_s2 + $0x50] sm:$0xff]  ;;  %v1774_v30 = vrot.slane %v544_v18, %v1498_v13 }
  0x28   :  { %1182 = vmatprep.subr.bf16.mxu0 %v1181_v1  ;;  %1213 = vmatprep.subr.bf16.mxu1 %v1212_v2  ;;  %v471_v1 = vld [vmem:[%s2007_s2 + $0xd8] sm:$0xff]  ;;  %v1199_v2 = vpack.c.bf16 %v93_v56, %v92_v55  ;;  %v1230_v3 = vpack.c.bf16 %v453_v60, %v452_v58  ;;  %v95_v7 = vld [vmem:[%s2005_s1 + $0x268] sm:$0xff]  ;;  %v96_v21 = vld [vmem:[%s2005_s1 + $0x270] sm:$0xff] }
  0x29   :  { %364 = vmatprep.mubr.f32.mxu0 %v150_v9  ;;  %v1232_v9 = vpack.c.bf16 %v471_v1, %v470_v63  ;;  %v473_v16 = vld [vmem:[%s2007_s2 + $0xe8] sm:$0xff]  ;;  %v1203_v17 = vpack.c.bf16 %v95_v7, %v94_v5  ;;  %v97_v22 = vld [vmem:[%s2005_s1 + $0x278] sm:$0xff]  ;;  %v492_v25 = vld [vmem:[%s2007_s2 + $0x180] sm:$0xff] }
  0x2a   :  { %1104 = vmatmul.mubr.msk.f32.vlgmr.msra.gmra.mrb[2].mxu1 %vm157_vm1, %v149_v10  ;;  %1184 = vmatpush3.bf16.msra.mxu0 %v1183_v11  ;;  %v455_v10 = vld [vmem:[%s2007_s2 + $0x58] sm:$0xff]  ;;  %v112_v11 = vld [vmem:[%s2005_s1 + $0x2f0] sm:$0xff]  ;;  %v457_v50 = vld [vmem:[%s2007_s2 + $0x68] sm:$0xff]  ;;  %v1207_v29 = vpack.c.bf16 %v97_v22, %v96_v21 }
  0x2b   :  { %1215 = vmatpush3.bf16.msra.mxu1 %v1214_v14  ;;  %1186 = vmatprep.subr.bf16.mxu0 %v1185_v15  ;;  %v113_v14 = vld [vmem:[%s2005_s1 + $0x2f8] sm:$0xff]  ;;  %v472_v15 = vld [vmem:[%s2007_s2 + $0xe0] sm:$0xff]  ;;  %v458_v33 = vld [vmem:[%s2007_s2 + $0x70] sm:$0xff] }
  0x2c   :  { %1217 = vmatprep.subr.bf16.mxu1 %v1216_v19  ;;  %649 = vmatprep.mubr.f32.mxu1 %v559_v23  ;;  %v1234_v19 = vpack.c.bf16 %v455_v10, %v454_v8  ;;  %v1205_v20 = vpack.c.bf16 %v113_v14, %v112_v11  ;;  %v456_v23 = vld [vmem:[%s2007_s2 + $0x60] sm:$0xff]  ;;  %v1236_v24 = vpack.c.bf16 %v473_v16, %v472_v15  ;;  %v477_v35 = vld [vmem:[%s2007_s2 + $0x108] sm:$0xff]  ;;  %v459_v37 = vld [vmem:[%s2007_s2 + $0x78] sm:$0xff] }
  0x2d   :  { %v1238_v31 = vpack.c.bf16 %v457_v50, %v456_v23  ;;  %v476_v34 = vld [vmem:[%s2007_s2 + $0x100] sm:$0xff]  ;;  %v525_v42 = vld [vmem:[%s2007_s2 + $0x288] sm:$0xff]  ;;  %v1242_v45 = vpack.c.bf16 %v459_v37, %v458_v33  ;;  %v479_v48 = vld [vmem:[%s2007_s2 + $0x118] sm:$0xff] }
  0x2e   :  { %1188 = vmatpush3.bf16.msra.mxu0 %v1187_v26  ;;  %v493_v26 = vld [vmem:[%s2007_s2 + $0x188] sm:$0xff]  ;;  %v524_v41 = vld [vmem:[%s2007_s2 + $0x280] sm:$0xff]  ;;  %v1246_v43 = vpack.c.bf16 %v477_v35, %v476_v34  ;;  %v526_v56 = vld [vmem:[%s2007_s2 + $0x290] sm:$0xff] }
  0x2f   :  { %1219 = vmatpush3.bf16.msra.mxu1 %v1218_v27  ;;  %1190 = vmatprep.subr.bf16.mxu0 %v1189_v28  ;;  %v474_v27 = vld [vmem:[%s2007_s2 + $0xf0] sm:$0xff]  ;;  %v475_v28 = vld [vmem:[%s2007_s2 + $0xf8] sm:$0xff]  ;;  %v508_v49 = vld [vmem:[%s2007_s2 + $0x200] sm:$0xff]  ;;  %v1276_v51 = vpack.c.bf16 %v525_v42, %v524_v41 }
  0x30   :  { %1221 = vmatprep.subr.bf16.mxu1 %v1220_v32  ;;  %v1244_v32 = vpack.c.bf16 %v493_v26, %v492_v25  ;;  %v1240_v36 = vpack.c.bf16 %v475_v28, %v474_v27  ;;  %v527_v58 = vld [vmem:[%s2007_s2 + $0x298] sm:$0xff]  ;;  %v480_v62 = vld [vmem:[%s2007_s2 + $0x120] sm:$0xff]  ;;  %v510_v63 = vld [vmem:[%s2007_s2 + $0x210] sm:$0xff] }
  0x31   :  { %v1280_v1 = vpack.c.bf16 %v527_v58, %v526_v56  ;;  %v528_v7 = vld [vmem:[%s2007_s2 + $0x2a0] sm:$0xff]  ;;  %v529_v8 = vld [vmem:[%s2007_s2 + $0x2a8] sm:$0xff]  ;;  %v482_v14 = vld [vmem:[%s2007_s2 + $0x130] sm:$0xff] }
  0x32   :  { %1192 = vmatpush3.bf16.msra.mxu0 %v1191_v38  ;;  %v494_v38 = vld [vmem:[%s2007_s2 + $0x190] sm:$0xff]  ;;  %v483_v15 = vld [vmem:[%s2007_s2 + $0x138] sm:$0xff]  ;;  %v512_v16 = vld [vmem:[%s2007_s2 + $0x220] sm:$0xff] }
  0x33   :  { %1223 = vmatpush3.bf16.msra.mxu1 %v1222_v39  ;;  %1194 = vmatprep.subr.bf16.mxu0 %v1193_v40  ;;  %v495_v39 = vld [vmem:[%s2007_s2 + $0x198] sm:$0xff]  ;;  %v1796_v40 = vmul.f32 %v1556_v46, %v1556_v46  ;;  %v478_v46 = vld [vmem:[%s2007_s2 + $0x110] sm:$0xff]  ;;  %v500_v18 = vld [vmem:[%s2007_s2 + $0x1c0] sm:$0xff]  ;;  %v1258_v22 = vpack.c.bf16 %v483_v15, %v482_v14 }
  0x34   :  { %1225 = vmatprep.subr.bf16.mxu1 %v1224_v44  ;;  %v560_v44 = vcombine.high %v1774_v30, %v1774_v30  ;;  %v1248_v47 = vpack.c.bf16 %v495_v39, %v494_v38  ;;  %v531_v21 = vld [vmem:[%s2007_s2 + $0x2b8] sm:$0xff]  ;;  %v484_v50 = vld [vmem:[%s2007_s2 + $0x140] sm:$0xff]  ;;  %v485_v25 = vld [vmem:[%s2007_s2 + $0x148] sm:$0xff] }
  0x35   :  { %v1826_v55 = vrot.slane %v1796_v40, %v1498_v13  ;;  %v514_v26 = vld [vmem:[%s2007_s2 + $0x230] sm:$0xff]  ;;  %v515_v28 = vld [vmem:[%s2007_s2 + $0x238] sm:$0xff]  ;;  %v533_v33 = vld [vmem:[%s2007_s2 + $0x2c8] sm:$0xff]  ;;  %v1262_v34 = vpack.c.bf16 %v485_v25, %v484_v50 }
  0x36   :  { %1196 = vmatpush3.bf16.msra.mxu0 %v1195_v52  ;;  %v509_v52 = vld [vmem:[%s2007_s2 + $0x208] sm:$0xff]  ;;  %v1290_v35 = vpack.c.bf16 %v515_v28, %v514_v26  ;;  %v486_v37 = vld [vmem:[%s2007_s2 + $0x150] sm:$0xff]  ;;  %v487_v38 = vld [vmem:[%s2007_s2 + $0x158] sm:$0xff] }
  0x37   :  { %1227 = vmatpush3.bf16.msra.mxu1 %v1226_v53  ;;  %1198 = vmatprep.subr.bf16.mxu0 %v1197_v54  ;;  %v496_v53 = vld [vmem:[%s2007_s2 + $0x1a0] sm:$0xff]  ;;  %v497_v54 = vld [vmem:[%s2007_s2 + $0x1a8] sm:$0xff]  ;;  %v1278_v60 = vpack.c.bf16 %v509_v52, %v508_v49  ;;  %v576_v5 = vcombine.high %v1826_v55, %v1826_v55  ;;  %v519_v56 = vld [vmem:[%s2007_s2 + $0x258] sm:$0xff] }
  0x38   :  { %1229 = vmatprep.subr.bf16.mxu1 %v1228_v59  ;;  %v1250_v59 = vpack.c.bf16 %v479_v48, %v478_v46  ;;  %v1252_v61 = vpack.c.bf16 %v497_v54, %v496_v53  ;;  %v516_v39 = vld [vmem:[%s2007_s2 + $0x240] sm:$0xff]  ;;  %v517_v42 = vld [vmem:[%s2007_s2 + $0x248] sm:$0xff]  ;;  %v1266_v46 = vpack.c.bf16 %v487_v38, %v486_v37  ;;  %v518_v53 = vld [vmem:[%s2007_s2 + $0x250] sm:$0xff] }
  0x39   :  { %v1294_v48 = vpack.c.bf16 %v517_v42, %v516_v39  ;;  %v489_v52 = vld [vmem:[%s2007_s2 + $0x168] sm:$0xff]  ;;  %v506_v58 = vld [vmem:[%s2007_s2 + $0x1f0] sm:$0xff] }
  0x3a   :  { %1200 = vmatpush3.bf16.msra.mxu0 %v1199_v2  ;;  %v511_v2 = vld [vmem:[%s2007_s2 + $0x218] sm:$0xff]  ;;  %v541_v14 = vld [vmem:[%s2007_s2 + $0x308] sm:$0xff] }
  0x3b   :  { %1231 = vmatpush3.bf16.msra.mxu1 %v1230_v3  ;;  %1202 = vmatprep.subr.bf16.mxu0 %v1201_v4  ;;  %v498_v3 = vld [vmem:[%s2007_s2 + $0x1b0] sm:$0xff]  ;;  %v499_v4 = vld [vmem:[%s2007_s2 + $0x1b8] sm:$0xff]  ;;  %v1282_v10 = vpack.c.bf16 %v511_v2, %v510_v63 }
  0x3c   :  { %1233 = vmatprep.subr.bf16.mxu1 %v1232_v9  ;;  %v1256_v11 = vpack.c.bf16 %v499_v4, %v498_v3  ;;  %v491_v2 = vld [vmem:[%s2007_s2 + $0x178] sm:$0xff]  ;;  %v520_v4 = vld [vmem:[%s2007_s2 + $0x260] sm:$0xff] }
  0x3e   :  { %1204 = vmatpush3.bf16.msra.mxu0 %v1203_v17  ;;  %v513_v17 = vld [vmem:[%s2007_s2 + $0x228] sm:$0xff] }
  0x3f   :  { %1235 = vmatpush3.bf16.msra.mxu1 %v1234_v19  ;;  %1206 = vmatprep.subr.bf16.mxu0 %v1205_v20  ;;  %v501_v19 = vld [vmem:[%s2007_s2 + $0x1c8] sm:$0xff]  ;;  %v530_v20 = vld [vmem:[%s2007_s2 + $0x2b0] sm:$0xff]  ;;  %v1286_v23 = vpack.c.bf16 %v513_v17, %v512_v16  ;;  %v561_v17 = vcombine.high %v1796_v40, %v1796_v40 }
  0x40   :  { %1237 = vmatprep.subr.bf16.mxu1 %v1236_v24  ;;  %v1260_v24 = vpack.c.bf16 %v501_v19, %v500_v18  ;;  %v1288_v27 = vpack.c.bf16 %v531_v21, %v530_v20  ;;  %v522_v16 = vld [vmem:[%s2007_s2 + $0x270] sm:$0xff] }
  0x41   :  { %v575_v20 = vrot.slane %v561_v17, %v1498_v13 }
  0x42   :  { %1208 = vmatpush3.bf16.msra.mxu0 %v1207_v29  ;;  %v502_v29 = vld [vmem:[%s2007_s2 + $0x1d0] sm:$0xff] }
  0x43   :  { %1239 = vmatpush3.bf16.msra.mxu1 %v1238_v31  ;;  %1245 = vmatprep.subr.bf16.mxu0 %v1244_v32  ;;  %v503_v31 = vld [vmem:[%s2007_s2 + $0x1d8] sm:$0xff]  ;;  %v532_v32 = vld [vmem:[%s2007_s2 + $0x2c0] sm:$0xff] }
  0x44   :  { %1241 = vmatprep.subr.bf16.mxu1 %v1240_v36  ;;  %v1264_v36 = vpack.c.bf16 %v503_v31, %v502_v29  ;;  %v1292_v41 = vpack.c.bf16 %v533_v33, %v532_v32 }
  0x45   :  { %365 = vmatmul.mubr.f32.vlgmr.msra.gmra.mrb[2].mxu0 %v1586_v57  ;;  %v481_v57 = vld [vmem:[%s2007_s2 + $0x128] sm:$0xff] }
  0x46   :  { %1247 = vmatpush3.bf16.msra.mxu0 %v1246_v43  ;;  %719 = vmatprep.mubr.f32.mxu0 %v560_v44  ;;  %v1254_v9 = vpack.c.bf16 %v481_v57, %v480_v62  ;;  %v504_v43 = vld [vmem:[%s2007_s2 + $0x1e0] sm:$0xff]  ;;  %v505_v44 = vld [vmem:[%s2007_s2 + $0x1e8] sm:$0xff]  ;;  %v1298_v57 = vpack.c.bf16 %v519_v56, %v518_v53 }
  0x47   :  { %1243 = vmatpush3.bf16.msra.mxu1 %v1242_v45  ;;  %1249 = vmatprep.subr.bf16.mxu0 %v1248_v47  ;;  %v534_v45 = vld [vmem:[%s2007_s2 + $0x2d0] sm:$0xff]  ;;  %v535_v47 = vld [vmem:[%s2007_s2 + $0x2d8] sm:$0xff]  ;;  %v1268_v49 = vpack.c.bf16 %v505_v44, %v504_v43 }
  0x48   :  { %1277 = vmatprep.subr.bf16.mxu1 %v1276_v51  ;;  %v488_v51 = vld [vmem:[%s2007_s2 + $0x160] sm:$0xff]  ;;  %v1296_v54 = vpack.c.bf16 %v535_v47, %v534_v45 }
  0x49   :  { %v1270_v62 = vpack.c.bf16 %v489_v52, %v488_v51 }
  0x4a   :  { %650 = vmatmul.mubr.f32.vlgmr.msra.gmra.mrb[4].mxu1 %v1611_v6  ;;  %1251 = vmatpush3.bf16.msra.mxu0 %v1250_v59  ;;  %v1284_v6 = vpack.c.bf16 %v529_v8, %v528_v7  ;;  %v507_v59 = vld [vmem:[%s2007_s2 + $0x1f8] sm:$0xff]  ;;  %v538_v7 = vld [vmem:[%s2007_s2 + $0x2f0] sm:$0xff] }
  0x4b   :  { %1279 = vmatpush3.bf16.msra.mxu1 %v1278_v60  ;;  %1253 = vmatprep.subr.bf16.mxu0 %v1252_v61  ;;  %v536_v60 = vld [vmem:[%s2007_s2 + $0x2e0] sm:$0xff]  ;;  %v537_v61 = vld [vmem:[%s2007_s2 + $0x2e8] sm:$0xff]  ;;  %v1272_v63 = vpack.c.bf16 %v507_v59, %v506_v58  ;;  %v539_v8 = vld [vmem:[%s2007_s2 + $0x2f8] sm:$0xff] }
  0x4c   :  { %1281 = vmatprep.subr.bf16.mxu1 %v1280_v1  ;;  %789 = vmatprep.mubr.f32.mxu1 %v576_v5  ;;  %v490_v1 = vld [vmem:[%s2007_s2 + $0x170] sm:$0xff]  ;;  %v1300_v3 = vpack.c.bf16 %v537_v61, %v536_v60  ;;  %v521_v5 = vld [vmem:[%s2007_s2 + $0x268] sm:$0xff]  ;;  %v1304_v15 = vpack.c.bf16 %v539_v8, %v538_v7 }
  0x4e   :  { %1255 = vmatpush3.bf16.msra.mxu0 %v1254_v9  ;;  %v1274_v9 = vpack.c.bf16 %v491_v2, %v490_v1 }
  0x4f   :  { %1283 = vmatpush3.bf16.msra.mxu1 %v1282_v10  ;;  %1257 = vmatprep.subr.bf16.mxu0 %v1256_v11  ;;  %v1302_v10 = vpack.c.bf16 %v521_v5, %v520_v4  ;;  %v540_v11 = vld [vmem:[%s2007_s2 + $0x300] sm:$0xff] }
  0x50   :  { %1285 = vmatprep.subr.bf16.mxu1 %v1284_v6  ;;  %v523_v6 = vld [vmem:[%s2007_s2 + $0x278] sm:$0xff]  ;;  %v1309_v18 = vpack.c.bf16 %v541_v14, %v540_v11 }
  0x51   :  { %v1306_v19 = vpack.c.bf16 %v523_v6, %v522_v16 }
  0x52   :  { %1259 = vmatpush3.bf16.msra.mxu0 %v1258_v22 }
  0x53   :  { %1287 = vmatpush3.bf16.msra.mxu1 %v1286_v23  ;;  %1261 = vmatprep.subr.bf16.mxu0 %v1260_v24 }
  0x54   :  { %1289 = vmatprep.subr.bf16.mxu1 %v1288_v27 }
  0x56   :  { %1263 = vmatpush3.bf16.msra.mxu0 %v1262_v34 }
  0x57   :  { %1291 = vmatpush3.bf16.msra.mxu1 %v1290_v35  ;;  %1265 = vmatprep.subr.bf16.mxu0 %v1264_v36 }
  0x58   :  { %1293 = vmatprep.subr.bf16.mxu1 %v1292_v41 }
  0x5a   :  { %1267 = vmatpush3.bf16.msra.mxu0 %v1266_v46 }
  0x5b   :  { %1295 = vmatpush3.bf16.msra.mxu1 %v1294_v48  ;;  %1269 = vmatprep.subr.bf16.mxu0 %v1268_v49 }
  0x5c   :  { %1297 = vmatprep.subr.bf16.mxu1 %v1296_v54 }
  0x5e   :  { %1271 = vmatpush3.bf16.msra.mxu0 %v1270_v62 }
  0x5f   :  { %1299 = vmatpush3.bf16.msra.mxu1 %v1298_v57  ;;  %1273 = vmatprep.subr.bf16.mxu0 %v1272_v63 }
  0x60   :  { %1301 = vmatprep.subr.bf16.mxu1 %v1300_v3 }
  0x62   :  { %1275 = vmatpush3.bf16.msra.mxu0 %v1274_v9 }
  0x63   :  { %1303 = vmatpush3.bf16.msra.mxu1 %v1302_v10  ;;  %1308 = vmatprep.subr.bf16.mxu0 %v1320_v0 }
  0x64   :  { %1305 = vmatprep.subr.bf16.mxu1 %v1304_v15 }
  0x65   :  { %720 = vmatmul.mubr.f32.vlgmr.msra.gmra.mrb[4].mxu0 %v1774_v30 }
  0x66   :  { %1310 = vmatpush3.bf16.msra.mxu0 %v1309_v18  ;;  %1110 = vmatprep.mubr.msk.f32.mxu0 %vm1321_vm0, %v1322_v12 }
  0x67   :  { %1307 = vmatpush3.bf16.msra.mxu1 %v1306_v19 }
  0x69   :  { %1111 = vmatmul.mubr.msk.f32.vlgmr.msra.gmra.mrb[6].mxu0 %vm157_vm1, %v575_v20 }
  0x6a   :  { %790 = vmatmul.mubr.f32.vlgmr.msra.gmra.mrb[6].mxu1 %v1826_v55 }
  0xf8   :  { %v915_v40 = vpop.f32.mrb[0].mxu0 }
  0xf9   :  { %v950_v21 = vpop.f32.mrb[0].mxu1  ;;  %v916_v22 = vpop.f32.mrb[1].mxu0 }
  0xfa   :  { %v917_v23 = vadd.f32 %v916_v22, %v915_v40  ;;  %v951_v24 = vpop.f32.mrb[1].mxu1 }
  0xfb   :  { %v952_v0 = vadd.f32 %v951_v24, %v950_v21 }
  0xfd   :  { %v297_v50 = vadd.f32 %v952_v0, %v917_v23  ;;  %v436_v25 = vpop.f32.mrb[2].mxu1 }
  0xfe   :  { %v1105_v30 = vpop.f32.mrb[3].mxu1 }
 0x118   :  { %v985_v26 = vpop.f32.mrb[2].mxu0 }
 0x119   :  { %v986_v13 = vpop.f32.mrb[3].mxu0 }
 0x11a   :  { %v987_v27 = vadd.f32 %v986_v13, %v985_v26 }
 0x11c   :  { %v367_v28 = vadd.f32 %v987_v27, %v297_v50 }
 0x11d   :  { %v1023_v12 = vpop.f32.mrb[4].mxu1 }
 0x11e   :  { %v437_v29 = vadd.f32 %v436_v25, %v367_v28  ;;  %v1024_v31 = vpop.f32.mrb[5].mxu1 }
 0x11f   :  { %v1025_v32 = vadd.f32 %v1024_v31, %v1023_v12 }
 0x120   :  { %441 = vst.msk [vmem:[%s2008_s3] sm:$0x3] %vm440_vm2, %v437_v29 }
 0x138   :  { %v1058_v55 = vpop.f32.mrb[4].mxu0 }
 0x139   :  { %v1059_v33 = vpop.f32.mrb[5].mxu0 }
 0x13a   :  { %v1060_v34 = vadd.f32 %v1059_v33, %v1058_v55 }
 0x13c   :  { %v722_v35 = vadd.f32 %v1060_v34, %v1025_v32  ;;  %v861_v36 = vpop.f32.mrb[6].mxu0 }
 0x13d   :  { %v1093_v37 = vpop.f32.mrb[6].mxu1  ;;  %v1112_v38 = vpop.f32.mrb[7].mxu0 }
 0x13e   :  { %v1094_v39 = vpop.f32.mrb[7].mxu1 }
 0x13f   :  { %v1095_v41 = vadd.f32 %v1094_v39, %v1093_v37 }
 0x141   :  { %v792_v42 = vadd.f32 %v1095_v41, %v722_v35 }
 0x143   :  { %v862_v43 = vadd.f32 %v861_v36, %v792_v42 }
 0x145   :  { %1317 = vrsqrt.f32 %v862_v43  ;;  %vm867_vm3 = vcmp.eq.f32.partialorder %v862_v43, inf  ;;  %v870_v47 = vand.u32 2147483648, %v862_v43  ;;  %vm869_vm4 = vcmp.eq.f32.partialorder %v862_v43, 0.0 }
 0x14f   :  { %v1318_v44 = vpop.eup %1317 }
 0x150   :  { %v866_v45 = vmul.f32 %v1318_v44, %v862_v43 }
 0x152   :  { %v868_v46 = vsel %vm867_vm3, %v862_v43, %v866_v45 }
 0x153   :  { %v871_v48 = vsel %vm869_vm4, %v870_v47, %v868_v46 }
 0x154   :  { %872 = vst.msk [vmem:[%s2009_s4] sm:$0x3] %vm440_vm2, %v871_v48 }

// kernel: bnn_forward.5
= control target key start
LH: loop header
LB: loop body
LE: loop exit
PB: predicated region body
PF: predicated region fallthrough
CT: control target
= control target key end

     0   :  { %v786_v0 = vmov 0.0|0.0   ;;  %vm787_vm0 = vmmov 0   ;;  %v788_v4 = vmov 0.0   ;;  %vm79_vm2 = vcmask 261120   ;;  %s1028_s8 = inlined_call_operand.vmem [shape: f32[32,32], index: 8, kind: input, shape index: {}]   ;;  %s1029_s0 = inlined_call_operand.vmem [shape: f32[8,32], index: 0, kind: input, shape index: {}]   ;;  %s1030_s1 = inlined_call_operand.vmem [shape: f32[8,32], index: 1, kind: input, shape index: {}]   ;;  %s1031_s2 = inlined_call_operand.vmem [shape: f32[8,32], index: 2, kind: input, shape index: {}]   ;;  %s1032_s6 = inlined_call_operand.vmem [shape: f32[32,32], index: 6, kind: input, shape index: {}]   ;;  %s1033_s10 = inlined_call_operand.vmem [shape: f32[32,32], index: 10, kind: input, shape index: {}]   ;;  %s1034_s12 = inlined_call_operand.vmem [shape: f32[32,32], index: 12, kind: input, shape index: {}]   ;;  %s1035_s9 = inlined_call_operand.vmem [shape: f32[1,32], index: 9, kind: input, shape index: {}]   ;;  %s1036_s7 = inlined_call_operand.vmem [shape: f32[1,32], index: 7, kind: input, shape index: {}]   ;;  %s1037_s3 = inlined_call_operand.vmem [shape: f32[8,32], index: 3, kind: input, shape index: {}]   ;;  %s1038_s14 = inlined_call_operand.vmem [shape: f32[32,10], index: 14, kind: input, shape index: {}]   ;;  %s1039_s16 = inlined_call_operand.vmem [shape: f32[32,10], index: 16, kind: input, shape index: {}]   ;;  %s1040_s13 = inlined_call_operand.vmem [shape: f32[1,32], index: 13, kind: input, shape index: {}]   ;;  %s1041_s11 = inlined_call_operand.vmem [shape: f32[1,32], index: 11, kind: input, shape index: {}]   ;;  %s1042_s4 = inlined_call_operand.vmem [shape: f32[8,32], index: 4, kind: input, shape index: {}]   ;;  %s1043_s17 = inlined_call_operand.vmem [shape: f32[1,10], index: 17, kind: input, shape index: {}]   ;;  %s1044_s15 = inlined_call_operand.vmem [shape: f32[1,10], index: 15, kind: input, shape index: {}]   ;;  %s1045_s5 = inlined_call_operand.vmem [shape: f32[8,10], index: 5, kind: input, shape index: {}]   ;;  %s1046_s18 = inlined_call_operand.vmem [shape: f32[8,10], index: 18, kind: output, shape index: {}]  }
   0x1   :  { %1048 = sst [smem:[#allocation2_spill]] %s1028_s8  ;;  %743 = vmatprep.subr.bf16.mxu1 %v786_v0  ;;  %690 = vmatprep.mubr.msk.f32.mxu1 %vm787_vm0, %v788_v4  ;;  %v61_v9 = vld [vmem:[%s1031_s2] sm:$0xff]  ;;  %v69_v11 = vld [vmem:[%s1032_s6 + $0x8] sm:$0xff]  ;;  %v70_v15 = vld [vmem:[%s1032_s6 + $0x10] sm:$0xff]  ;;  %vm611_vm11 = vcmask 80896  }
   0x2   :  { %1049 = sst [smem:[#allocation3_spill]] %s1029_s0  ;;  %s1051_s29 = sld [smem:[#allocation2_spill]]  ;;  %737 = vmatprep.subr.bf16.mxu0 %v786_v0  ;;  %679 = vmatprep.mubr.msk.f32.mxu0 %vm787_vm0, %v788_v4  ;;  %v68_v10 = vld [vmem:[%s1032_s6] sm:$0xff]  ;;  %v71_v16 = vld [vmem:[%s1032_s6 + $0x18] sm:$0xff]  ;;  %v252_v23 = vld [vmem:[%s1033_s10 + $0x8] sm:$0xff] }
   0x3   :  { %1050 = sst [smem:[#allocation4_spill]] %s1030_s1  ;;  %s1052_s23 = sld [smem:[#allocation3_spill]]  ;;  %v738_v14 = vpack.c.bf16 %v69_v11, %v68_v10  ;;  %v741_v18 = vpack.c.bf16 %v71_v16, %v70_v15  ;;  %v251_v22 = vld [vmem:[%s1033_s10] sm:$0xff]  ;;  %v337_v26 = vld [vmem:[%s1034_s12 + $0x8] sm:$0xff]  ;;  %v253_v28 = vld [vmem:[%s1033_s10 + $0x10] sm:$0xff] }
   0x4   :  { %s1053_s26 = sld [smem:[#allocation4_spill]]  ;;  %v750_v24 = vpack.c.bf16 %v252_v23, %v251_v22  ;;  %v336_v25 = vld [vmem:[%s1034_s12] sm:$0xff]  ;;  %v254_v29 = vld [vmem:[%s1033_s10 + $0x18] sm:$0xff]  ;;  %v338_v31 = vld [vmem:[%s1034_s12 + $0x10] sm:$0xff] }
   0x5   :  { %739 = vmatpush3.bf16.msra.mxu0 %v738_v14  ;;  %v756_v27 = vpack.c.bf16 %v337_v26, %v336_v25  ;;  %v753_v30 = vpack.c.bf16 %v254_v29, %v253_v28  ;;  %v339_v32 = vld [vmem:[%s1034_s12 + $0x18] sm:$0xff]  ;;  %v631_v34 = vld [vmem:[%s1035_s9] ss:$0 sm:$0xff]  ;;  %v434_v54 = vld [vmem:[%s1038_s14 + $0x8] sm:$0xff] }
   0x6   :  { %740 = vmatprep.subr.bf16.mxu0 %v786_v0  ;;  %v759_v33 = vpack.c.bf16 %v339_v32, %v338_v31  ;;  %v629_v41 = vld [vmem:[%s1036_s7] ss:$0 sm:$0xff]  ;;  %v519_v57 = vld [vmem:[%s1039_s16 + $0x8] sm:$0xff]  ;;  %v435_v58 = vld [vmem:[%s1038_s14 + $0x10] sm:$0xff] }
   0x7   :  { %v67_v43 = vld [vmem:[%s1037_s3] sm:$0xff]  ;;  %v436_v59 = vld [vmem:[%s1038_s14 + $0x18] sm:$0xff]  ;;  %v520_v61 = vld [vmem:[%s1039_s16 + $0x10] sm:$0xff] }
   0x8   :  { %v154_v1 = vld [vmem:[%s1051_s29] sm:$0xff]  ;;  %v155_v2 = vld [vmem:[%s1051_s29 + $0x8] sm:$0xff]  ;;  %v156_v3 = vld [vmem:[%s1051_s29 + $0x10] sm:$0xff]  ;;  %v765_v63 = vpack.c.bf16 %v436_v59, %v435_v58 }
   0x9   :  { %v744_v5 = vpack.c.bf16 %v155_v2, %v154_v1  ;;  %v157_v6 = vld [vmem:[%s1051_s29 + $0x18] sm:$0xff]  ;;  %v59_v7 = vld [vmem:[%s1052_s23] sm:$0xff]  ;;  %742 = vmatpush3.bf16.msra.mxu0 %v741_v18 }
   0xa   :  { %v60_v8 = vld [vmem:[%s1053_s26] sm:$0xff]  ;;  %v747_v12 = vpack.c.bf16 %v157_v6, %v156_v3  ;;  %749 = vmatprep.subr.bf16.mxu0 %v786_v0  ;;  %v521_v62 = vld [vmem:[%s1039_s16 + $0x18] sm:$0xff] }
   0xb   :  { %745 = vmatpush3.bf16.msra.mxu1 %v744_v5  ;;  %v62_v13 = vmul.f32 %v61_v9, %v60_v8  ;;  %v433_v53 = vld [vmem:[%s1038_s14] sm:$0xff]  ;;  %v771_v1 = vpack.c.bf16 %v521_v62, %v520_v61 }
   0xc   :  { %746 = vmatprep.subr.bf16.mxu1 %v786_v0  ;;  %v518_v55 = vld [vmem:[%s1039_s16] sm:$0xff]  ;;  %v762_v56 = vpack.c.bf16 %v434_v54, %v433_v53 }
   0xd   :  { %v63_v17 = vadd.f32 %v62_v13, %v59_v7  ;;  %v768_v60 = vpack.c.bf16 %v519_v57, %v518_v55  ;;  %v635_v3 = vld [vmem:[%s1040_s13] ss:$0 sm:$0xff] }
   0xe   :  { %v633_v10 = vld [vmem:[%s1041_s11] ss:$0 sm:$0xff] }
   0xf   :  { %748 = vmatpush3.bf16.msra.mxu1 %v747_v12  ;;  %vm64_vm1 = vcmp.ge.f32.partialorder %v63_v17, 0.0  ;;  %v65_v19 = vmul.f32 0.01, %v63_v17  ;;  %v637_v28 = vld [vmem:[%s1044_s15] ss:$0 sm:$0xff] }
  0x10   :  { %755 = vmatprep.subr.bf16.mxu1 %v786_v0  ;;  %v432_v29 = vld [vmem:[%s1045_s5] sm:$0xff] }
  0x11   :  { %v66_v20 = vsel %vm64_vm1, %v63_v17, %v65_v19 }
  0x12   :  { %v153_v21 = vmul.f32 %v66_v20, %v66_v20  ;;  %680 = vmatmul.mubr.msk.f32.vlgmr.msra.gmra.mrb[0].mxu0 %vm79_vm2, %v66_v20 }
  0x13   :  { %701 = vmatprep.mubr.msk.f32.mxu0 %vm787_vm0, %v788_v4  ;;  %751 = vmatpush3.bf16.msra.mxu0 %v750_v24 }
  0x14   :  { %691 = vmatmul.mubr.msk.f32.vlgmr.msra.gmra.mrb[0].mxu1 %vm79_vm2, %v153_v21  ;;  %752 = vmatprep.subr.bf16.mxu0 %v786_v0  ;;  %v639_v21 = vld [vmem:[%s1043_s17] ss:$0 sm:$0xff] }
  0x15   :  { %712 = vmatprep.mubr.msk.f32.mxu1 %vm787_vm0, %v788_v4  ;;  %757 = vmatpush3.bf16.msra.mxu1 %v756_v27 }
  0x16   :  { %758 = vmatprep.subr.bf16.mxu1 %v786_v0 }
  0x17   :  { %754 = vmatpush3.bf16.msra.mxu0 %v753_v30 }
  0x18   :  { %761 = vmatprep.subr.bf16.mxu0 %v786_v0 }
  0x19   :  { %760 = vmatpush3.bf16.msra.mxu1 %v759_v33 }
  0x1a   :  { %767 = vmatprep.subr.bf16.mxu1 %v786_v0 }
  0xe5   :  { %v149_v36 = vpop.f32.mrb[0].mxu0 }
  0xe6   :  { %v681_v39 = vpop.f32.mrb[1].mxu0  ;;  %v150_v45 = vadd.f32 %v629_v41, %v149_v36 }
  0xe7   :  { %v234_v35 = vpop.f32.mrb[0].mxu1 }
  0xe8   :  { %v235_v37 = vadd.f32 %v631_v34, %v234_v35  ;;  %v692_v38 = vpop.f32.mrb[1].mxu1 }
  0xea   :  { %776 = vrsqrt.f32 %v235_v37  ;;  %vm240_vm3 = vcmp.eq.f32.partialorder %v235_v37, inf  ;;  %v243_v44 = vand.u32 2147483648, %v235_v37  ;;  %vm242_vm4 = vcmp.eq.f32.partialorder %v235_v37, 0.0 }
  0xf4   :  { %v777_v40 = vpop.eup %776 }
  0xf5   :  { %v239_v42 = vmul.f32 %v777_v40, %v235_v37 }
  0xf7   :  { %v241_v46 = vsel %vm240_vm3, %v235_v37, %v239_v42 }
  0xf8   :  { %v244_v47 = vsel %vm242_vm4, %v243_v44, %v241_v46 }
  0xf9   :  { %v245_v48 = vmul.f32 %v244_v47, %v67_v43 }
  0xfb   :  { %v246_v49 = vadd.f32 %v245_v48, %v150_v45 }
  0xfd   :  { %vm247_vm5 = vcmp.ge.f32.partialorder %v246_v49, 0.0  ;;  %v248_v50 = vmul.f32 0.01, %v246_v49 }
  0xff   :  { %v249_v51 = vsel %vm247_vm5, %v246_v49, %v248_v50 }
 0x100   :  { %702 = vmatmul.mubr.msk.f32.vlgmr.msra.gmra.mrb[2].mxu0 %vm79_vm2, %v249_v51  ;;  %v335_v52 = vmul.f32 %v249_v51, %v249_v51 }
 0x101   :  { %723 = vmatprep.mubr.msk.f32.mxu0 %vm787_vm0, %v788_v4  ;;  %763 = vmatpush3.bf16.msra.mxu0 %v762_v56 }
 0x102   :  { %713 = vmatmul.mubr.msk.f32.vlgmr.msra.gmra.mrb[2].mxu1 %vm79_vm2, %v335_v52  ;;  %764 = vmatprep.subr.bf16.mxu0 %v786_v0 }
 0x103   :  { %734 = vmatprep.mubr.msk.f32.mxu1 %vm787_vm0, %v788_v4  ;;  %769 = vmatpush3.bf16.msra.mxu1 %v768_v60 }
 0x104   :  { %770 = vmatprep.subr.bf16.mxu1 %v786_v0  ;;  %v250_v0 = vld [vmem:[%s1042_s4] sm:$0xff] }
 0x105   :  { %766 = vmatpush3.bf16.msra.mxu0 %v765_v63 }
 0x107   :  { %772 = vmatpush3.bf16.msra.mxu1 %v771_v1 }
 0x1d3   :  { %v331_v2 = vpop.f32.mrb[2].mxu0 }
 0x1d4   :  { %v703_v4 = vpop.f32.mrb[3].mxu0  ;;  %v332_v14 = vadd.f32 %v633_v10, %v331_v2 }
 0x1d5   :  { %v416_v5 = vpop.f32.mrb[2].mxu1 }
 0x1d6   :  { %v417_v6 = vadd.f32 %v635_v3, %v416_v5  ;;  %v714_v7 = vpop.f32.mrb[3].mxu1 }
 0x1d8   :  { %778 = vrsqrt.f32 %v417_v6  ;;  %vm422_vm6 = vcmp.eq.f32.partialorder %v417_v6, inf  ;;  %v425_v11 = vand.u32 2147483648, %v417_v6  ;;  %vm424_vm7 = vcmp.eq.f32.partialorder %v417_v6, 0.0 }
 0x1e2   :  { %v779_v8 = vpop.eup %778 }
 0x1e3   :  { %v421_v9 = vmul.f32 %v779_v8, %v417_v6 }
 0x1e5   :  { %v423_v12 = vsel %vm422_vm6, %v417_v6, %v421_v9 }
 0x1e6   :  { %v426_v13 = vsel %vm424_vm7, %v425_v11, %v423_v12 }
 0x1e7   :  { %v427_v15 = vmul.f32 %v426_v13, %v250_v0 }
 0x1e9   :  { %v428_v16 = vadd.f32 %v427_v15, %v332_v14 }
 0x1eb   :  { %vm429_vm8 = vcmp.ge.f32.partialorder %v428_v16, 0.0  ;;  %v430_v17 = vmul.f32 0.01, %v428_v16 }
 0x1ed   :  { %v431_v18 = vsel %vm429_vm8, %v428_v16, %v430_v17 }
 0x1ee   :  { %724 = vmatmul.mubr.msk.f32.vlgmr.msra.gmra.mrb[4].mxu0 %vm79_vm2, %v431_v18  ;;  %v517_v19 = vmul.f32 %v431_v18, %v431_v18 }
 0x1f0   :  { %735 = vmatmul.mubr.msk.f32.vlgmr.msra.gmra.mrb[4].mxu1 %vm79_vm2, %v517_v19 }
 0x2c1   :  { %v513_v20 = vpop.f32.mrb[4].mxu0 }
 0x2c2   :  { %v725_v22 = vpop.f32.mrb[5].mxu0  ;;  %v514_v33 = vadd.f32 %v637_v28, %v513_v20 }
 0x2c3   :  { %v598_v23 = vpop.f32.mrb[4].mxu1 }
 0x2c4   :  { %v599_v24 = vadd.f32 %v639_v21, %v598_v23  ;;  %v736_v25 = vpop.f32.mrb[5].mxu1 }
 0x2c6   :  { %780 = vrsqrt.f32 %v599_v24  ;;  %vm604_vm9 = vcmp.eq.f32.partialorder %v599_v24, inf  ;;  %v607_v30 = vand.u32 2147483648, %v599_v24  ;;  %vm606_vm10 = vcmp.eq.f32.partialorder %v599_v24, 0.0 }
 0x2d0   :  { %v781_v26 = vpop.eup %780 }
 0x2d1   :  { %v603_v27 = vmul.f32 %v781_v26, %v599_v24 }
 0x2d3   :  { %v605_v31 = vsel %vm604_vm9, %v599_v24, %v603_v27 }
 0x2d4   :  { %v608_v32 = vsel %vm606_vm10, %v607_v30, %v605_v31 }
 0x2d5   :  { %v609_v34 = vmul.f32 %v608_v32, %v432_v29 }
 0x2d7   :  { %v610_v35 = vadd.f32 %v609_v34, %v514_v33 }
 0x2d9   :  { %v612_v36 = vsel %vm611_vm11, %v610_v35, -inf }
 0x2da   :  { %613 = vmax.xlane.f32.xlu0 %v612_v36 }
 0x367   :  { %v614_v37 = vpop.xlane.xlu0 %613 }
 0x368   :  { %v615_v38 = vsub.f32 %v610_v35, %v614_v37 }
 0x36a   :  { %v616_v39 = vmul.f32 1.442695, %v615_v38 }
 0x36c   :  { %782 = vpow2.f32 %v616_v39 }
 0x376   :  { %v783_v40 = vpop.eup %782 }
 0x377   :  { %v618_v41 = vsel %vm611_vm11, %v783_v40, 0.0 }
 0x378   :  { %619 = vadd.xlane.f32.xlu0 %v618_v41 }
 0x405   :  { %v620_v42 = vpop.xlane.xlu0 %619 }
 0x406   :  { %784 = vlog2.f32 %v620_v42 }
 0x410   :  { %v785_v43 = vpop.eup %784 }
 0x411   :  { %v622_v44 = vmul.f32 0.6931472, %v785_v43 }
 0x413   :  { %v623_v45 = vsub.f32 %v615_v38, %v622_v44 }
 0x415   :  { %624 = vst.msk [vmem:[%s1046_s18] sm:$0xff] %vm611_vm11, %v623_v45 }

</bundles_post_ra>
